<compile_context>
chip_gen: v7x
topology: tpu7x:2x2x1
jax: 0.10.0
libtpu: 0.0.40
codegen_flags: <defaults>
</compile_context>

<pallas_src>
import jax
import jax.numpy as jnp
from jax.experimental import pallas as pl
from jax.experimental.pallas import tpu as pltpu

EPS = 1e-4  # scn.BatchNormReLU default eps


# ---------------------------------------------------------------------------
# Fused kernel: (BN scale/shift + ReLU) -> 3x3x3 SAME conv [-> BN2 stats]
#               [+ residual]
# ---------------------------------------------------------------------------
def _make_kernel(*, td, H, L, Lo, DH, num_d, has_residual, want_stats,
                 compute_dtype=jnp.float32):
    M = td * H            # output rows per tile (flattened (d, h))
    Mw = (td + 2) * H     # rows including the one-row d-halo on each side

    def kernel(*refs):
        it = iter(refs)
        bnp_ref = next(it)            # (2, L)  row0 = scale, row1 = shift
        x_ref = next(it)              # (DH, L) whole-sample slab (resident)
        band_ref = next(it)           # (9, L, Lo) banded tap weights
        res_ref = next(it) if has_residual else None   # (M, Lo)
        o_ref = next(it)              # (M, Lo)
        stats_ref = next(it) if want_stats else None    # (2, Lo)

        dt = pl.program_id(1)
        row0 = pl.multiple_of(dt * M, M)

        scale = bnp_ref[0:1, :]
        shift = bnp_ref[1:2, :]

        def bnrelu(v):
            return jnp.maximum(v * scale + shift, 0.0)

        # BN+ReLU of this tile's rows plus one halo d-row on each side.
        # Halo rows outside [0, D) are inactive submanifold sites => exact
        # zeros (NOT BN(0)), so zero them AFTER the affine+ReLU.
        z0 = bnrelu(x_ref[pl.ds(row0, M), :])
        p_start = pl.multiple_of(jnp.maximum(row0 - H, 0), H)
        n_start = pl.multiple_of(jnp.minimum(row0 + M, DH - H), H)
        zp = jnp.where(dt > 0, bnrelu(x_ref[pl.ds(p_start, H), :]), 0.0)
        zn = jnp.where(dt < num_d - 1, bnrelu(x_ref[pl.ds(n_start, H), :]), 0.0)
        zw = jnp.concatenate([zp, z0, zn], axis=0).astype(compute_dtype)  # (Mw, L)

        # h position of every flattened row (for the kh halo masks).
        hpos = jax.lax.broadcasted_iota(jnp.int32, (Mw, 1), 0) % H

        acc = jnp.zeros((M, Lo), jnp.float32)
        for kh in range(3):
            if kh == 1:
                zs_full = zw
            else:
                # output h uses input h + (kh - 1): shift the flattened rows
                # with an XLU roll, then zero rows whose shifted h left [0, H).
                zs_full = pltpu.roll(zw, shift=(1 - kh) % Mw, axis=0)
                if kh == 0:
                    zs_full = jnp.where(hpos >= 1, zs_full, 0)
                else:
                    zs_full = jnp.where(hpos <= H - 2, zs_full, 0)
            for kd in range(3):
                zs = jax.lax.slice(zs_full, (kd * H, 0), (kd * H + M, L))
                acc = acc + jnp.dot(zs, band_ref[kd * 3 + kh],
                                    preferred_element_type=jnp.float32)

        if want_stats:
            # Per-lane sum / sum-of-squares of this tile's conv output (the
            # next BatchNorm's input); folded to per-channel on the host side.
            stats_ref[0:1, :] = jnp.sum(acc, axis=0, keepdims=True)
            stats_ref[1:2, :] = jnp.sum(acc * acc, axis=0, keepdims=True)

        if has_residual:
            acc = acc + res_ref[...]
        o_ref[...] = acc.astype(o_ref.dtype)

    return kernel


def _fused_bn_conv(x2d, band, bnp, *, D, H, num_d, td, residual=None,
                   want_stats=False, compute_dtype=jnp.float32):
    """y = Conv3x3x3_SAME(ReLU(BN(x))) [+ residual], layout (N, D*H, W*C)."""
    N, DH, L = x2d.shape
    Lo = band.shape[-1]
    M = td * H

    kernel = _make_kernel(td=td, H=H, L=L, Lo=Lo, DH=DH, num_d=num_d,
                          has_residual=residual is not None,
                          want_stats=want_stats, compute_dtype=compute_dtype)

    in_specs = [
        pl.BlockSpec((2, L), lambda n, dt: (0, 0)),                 # BN affine
        pl.BlockSpec((None, DH, L), lambda n, dt: (n, 0, 0)),       # sample slab
        pl.BlockSpec((9, L, Lo), lambda n, dt: (0, 0, 0)),          # band weights
    ]
    args = [bnp, x2d, band]
    if residual is not None:
        in_specs.append(pl.BlockSpec((None, M, Lo), lambda n, dt: (n, dt, 0)))
        args.append(residual)

    y_shape = jax.ShapeDtypeStruct((N, DH, Lo), jnp.float32)
    y_spec = pl.BlockSpec((None, M, Lo), lambda n, dt: (n, dt, 0))
    if want_stats:
        out_shape = (y_shape,
                     jax.ShapeDtypeStruct((N, num_d, 2, Lo), jnp.float32))
        out_specs = (y_spec,
                     pl.BlockSpec((None, None, 2, Lo), lambda n, dt: (n, dt, 0, 0)))
    else:
        out_shape = y_shape
        out_specs = y_spec

    flops = 2 * 9 * N * num_d * M * L * Lo
    bytes_accessed = 4 * (N * num_d * DH * L + N * DH * Lo + 9 * L * Lo
                          + (N * DH * Lo if residual is not None else 0))
    # Rough VMEM footprint: double-buffered inputs/outputs + in-register window.
    est_vmem = 4 * (2 * (DH * L + 9 * L * Lo + 2 * L)
                    + 2 * M * Lo * (2 if residual is not None else 1)
                    + 6 * (M + 2 * H) * L + 2 * M * Lo)
    vmem_limit = None
    if est_vmem > 30 * 1024 * 1024:
        vmem_limit = int(min(est_vmem * 1.25, 110 * 1024 * 1024))

    return pl.pallas_call(
        kernel,
        out_shape=out_shape,
        grid=(N, num_d),
        in_specs=in_specs,
        out_specs=out_specs,
        cost_estimate=pl.CostEstimate(flops=flops, transcendentals=0,
                                      bytes_accessed=bytes_accessed),
        compiler_params=pltpu.CompilerParams(
            dimension_semantics=("parallel", "parallel"),
            vmem_limit_bytes=vmem_limit),
    )(*args)


# ---------------------------------------------------------------------------
# Wrapper-side glue (tiny, trace-time / XLA)
# ---------------------------------------------------------------------------
def _pick_tile_d(D, H, tile_d):
    """Largest divisor of D <= tile_d whose flattened tile keeps 8-row tiling."""
    for td in range(min(tile_d, D), 0, -1):
        if D % td == 0 and (td * H) % 8 == 0:
            return td
    return D  # full extent is always a legal block


def _bn_affine(feats_2d, gamma, beta):
    """Training-mode (batch-stat) BN folded into per-channel scale/shift."""
    mean = jnp.mean(feats_2d, axis=0)
    var = jnp.mean(jnp.square(feats_2d - mean), axis=0)   # biased, as in scn
    scale = gamma.astype(jnp.float32) * jax.lax.rsqrt(var + EPS)
    shift = beta.astype(jnp.float32) - mean * scale
    return scale, shift


def _lane_affine(scale_c, shift_c, W):
    """Tile per-channel scale/shift along the W*C lane axis -> (2, W*C)."""
    return jnp.stack([jnp.tile(scale_c, W), jnp.tile(shift_c, W)],
                     axis=0).astype(jnp.float32)


def _banded_weights(w, W):
    """(3,3,3,Cin,Cout) conv weights -> (9, W*Cin, W*Cout) banded matrices.

    The (kw, c_in) contraction of the SAME conv becomes a lane-dense matmul
    over the UNPADDED lane axis; out-of-range kw taps are zeroed explicitly."""
    K = w.shape[0]
    C, Co = w.shape[3], w.shape[4]
    wi = jnp.arange(W)[:, None]            # input w index
    wo = jnp.arange(W)[None, :]            # output w index
    kw = wi - wo + 1                       # tap index (pad = 1)
    valid = (kw >= 0) & (kw < K)
    kw_c = jnp.clip(kw, 0, K - 1)
    taps = w[:, :, kw_c, :, :]             # (3, 3, W, W, Cin, Cout)
    taps = jnp.where(valid[None, None, :, :, None, None], taps, 0.0)
    band = taps.transpose(0, 1, 2, 4, 3, 5)  # (kd, kh, w_in, c_in, w_out, c_out)
    return band.reshape(K * K, W * C, W * Co).astype(jnp.float32)


# ---------------------------------------------------------------------------
# Full residual block forward
# ---------------------------------------------------------------------------
def residual_block_basic(x, params, *, tile_d=64, compute_dtype=jnp.float32):
    N, D, H, W, C = x.shape
    x = x.astype(jnp.float32)
    L = W * C
    x2d = x.reshape(N, D * H, L)           # lane-dense layout, no padding

    td = _pick_tile_d(D, H, tile_d)
    num_d = D // td

    w1 = params["w1"].reshape(3, 3, 3, C, C).astype(jnp.float32)
    w2 = params["w2"].reshape(3, 3, 3, C, C).astype(jnp.float32)
    band1 = _banded_weights(w1, W).astype(compute_dtype)
    band2 = _banded_weights(w2, W).astype(compute_dtype)

    # BN1 batch stats: one cheap XLA reduction over the raw input.
    s1, b1 = _bn_affine(x.reshape(-1, C), params["gamma1"], params["beta1"])
    bnp1 = _lane_affine(s1, b1, W)

    # bnr1 -> subconv1, with BN2's (sum, sum_sq) emitted by the same kernel so
    # y1 is never re-read from HBM for the statistics.
    y1, stats = _fused_bn_conv(x2d, band1, bnp1, D=D, H=H, num_d=num_d, td=td,
                               want_stats=True, compute_dtype=compute_dtype)

    cnt = N * D * H * W
    folded = stats.sum(axis=(0, 1)).reshape(2, W, C).sum(axis=1)   # (2, C)
    mean2 = folded[0] / cnt
    var2 = jnp.maximum(folded[1] / cnt - mean2 * mean2, 0.0)       # biased var
    scale2 = params["gamma2"].astype(jnp.float32) * jax.lax.rsqrt(var2 + EPS)
    shift2 = params["beta2"].astype(jnp.float32) - mean2 * scale2
    bnp2 = _lane_affine(scale2, shift2, W)

    # bnr2 -> subconv2 -> AddTable (residual add fused into the conv kernel).
    out = _fused_bn_conv(y1, band2, bnp2, D=D, H=H, num_d=num_d, td=td,
                         residual=x2d, want_stats=False,
                         compute_dtype=compute_dtype)
    return out.reshape(N, D, H, W, C)


# ---------------------------------------------------------------------------
# Pure-JAX reference (im2col formulation) for a correctness check
# ---------------------------------------------------------------------------
def _im2col_3d(feat, dense_shape, k):
    N, D, H, W, C = dense_shape
    x = feat.reshape(N, D, H, W, C)
    p = k // 2
    xp = jnp.pad(x, ((0, 0), (p, p), (p, p), (p, p), (0, 0)))
    cols = []
    for kd in range(k):
        for kh in range(k):
            for kw in range(k):
                cols.append(xp[:, kd:kd + D, kh:kh + H, kw:kw + W, :])
    cols = jnp.stack(cols, axis=-2)
    return cols.reshape(N * D * H * W, k * k * k * C)


def residual_block_ref(x, params):
    N, D, H, W, C = x.shape
    xf = x.reshape(-1, C).astype(jnp.float32)

    def bnr(f, g, b):
        m = jnp.mean(f, axis=0)
        v = jnp.mean(jnp.square(f - m), axis=0)
        return jnp.maximum((f - m) * jax.lax.rsqrt(v + EPS) * g + b, 0.0)

    def conv(f, w):
        return _im2col_3d(f, (N, D, H, W, C), 3) @ w.reshape(27 * C, C)

    y = bnr(xf, params["gamma1"], params["beta1"])
    y = conv(y, params["w1"])
    y = bnr(y, params["gamma2"], params["beta2"])
    y = conv(y, params["w2"])
    return (xf + y).reshape(N, D, H, W, C)


if __name__ == "__main__":
    # inplanes=4, kernel=3, dim=3; small dense grid 2 x 8^3 x 4
    N, D, H, W, C, K = 2, 8, 8, 8, 4, 3

    key = jax.random.PRNGKey(0)
    kx, kg1, kb1, kg2, kb2, kw1, kw2 = jax.random.split(key, 7)

    x = jax.random.normal(kx, (N, D, H, W, C), dtype=jnp.float32)
    params = {
        "gamma1": 1.0 + 0.1 * jax.random.normal(kg1, (C,), jnp.float32),
        "beta1": 0.1 * jax.random.normal(kb1, (C,), jnp.float32),
        "gamma2": 1.0 + 0.1 * jax.random.normal(kg2, (C,), jnp.float32),
        "beta2": 0.1 * jax.random.normal(kb2, (C,), jnp.float32),
        # SubmanifoldConvolution weights: (kernel_volume, in_planes, out_planes)
        "w1": 0.1 * jax.random.normal(kw1, (K ** 3, C, C), jnp.float32),
        "w2": 0.1 * jax.random.normal(kw2, (K ** 3, C, C), jnp.float32),
    }

    fwd = jax.jit(lambda xx: residual_block_basic(xx, params))
    out = jax.block_until_ready(fwd(x))

    ref = residual_block_ref(x, params)
    assert out.shape == (N, D, H, W, C)
    err = float(jnp.max(jnp.abs(out - ref)))
    assert jnp.allclose(out, ref, atol=1e-4, rtol=1e-4), err

    print("KERNEL_OK")
</pallas_src>

<mosaic_0001>
module attributes {stable_mosaic.version = 11 : i64} {
  func.func @kernel(%arg0: i32, %arg1: i32, %arg2: memref<2x32xf32, #tpu.memory_space<vmem>>, %arg3: memref<1x64x32xf32, #tpu.memory_space<vmem>>, %arg4: memref<9x32x32xf32, #tpu.memory_space<vmem>>, %arg5: memref<1x64x32xf32, #tpu.memory_space<vmem>>, %arg6: memref<1x1x2x32xf32, #tpu.memory_space<vmem>>) attributes {dimension_semantics = [#tpu.dimension_semantics<parallel>, #tpu.dimension_semantics<parallel>], iteration_bounds = array<i64: 2, 1>, scalar_prefetch = 0 : i64, scratch_operands = 0 : i64, tpu.core_type = #tpu.core_type<tc>, window_params = [{pipeline_mode = #tpu.pipeline_mode<synchronous>, transform_indices = @transform_0, window_bounds = array<i64: 2, 32>}, {transform_indices = @transform_1, window_bounds = array<i64: 1, 64, 32>}, {pipeline_mode = #tpu.pipeline_mode<synchronous>, transform_indices = @transform_2, window_bounds = array<i64: 9, 32, 32>}, {transform_indices = @transform_3, window_bounds = array<i64: 1, 64, 32>}, {transform_indices = @transform_4, window_bounds = array<i64: 1, 1, 2, 32>}]} {
    %c64_i32 = arith.constant 64 : i32
    %0 = arith.muli %arg1, %c64_i32 : i32
    %1 = tpu.assume_multiple %0, 64 : i32
    %c0 = arith.constant 0 : index
    %c0_0 = arith.constant 0 : index
    %2 = vector.load %arg2[%c0, %c0_0] : memref<2x32xf32, #tpu.memory_space<vmem>>, vector<1x32xf32>
    %c1 = arith.constant 1 : index
    %c0_1 = arith.constant 0 : index
    %3 = vector.load %arg2[%c1, %c0_1] : memref<2x32xf32, #tpu.memory_space<vmem>>, vector<1x32xf32>
    %c0_2 = arith.constant 0 : index
    %4 = arith.index_cast %1 : i32 to index
    %c0_3 = arith.constant 0 : index
    %5 = vector.load %arg3[%c0_2, %4, %c0_3] : memref<1x64x32xf32, #tpu.memory_space<vmem>>, vector<1x64x32xf32>
    %6 = vector.shape_cast %5 : vector<1x64x32xf32> to vector<64x32xf32>
    %7 = vector.broadcast %2 : vector<1x32xf32> to vector<64x32xf32>
    %8 = arith.mulf %6, %7 : vector<64x32xf32>
    %9 = vector.broadcast %3 : vector<1x32xf32> to vector<64x32xf32>
    %10 = arith.addf %8, %9 : vector<64x32xf32>
    %cst = arith.constant 0.000000e+00 : f32
    %11 = vector.broadcast %cst : f32 to vector<64x32xf32>
    %12 = arith.maximumf %10, %11 : vector<64x32xf32>
    %c8_i32 = arith.constant 8 : i32
    %13 = arith.subi %1, %c8_i32 : i32
    %c0_i32 = arith.constant 0 : i32
    %14 = arith.maxsi %13, %c0_i32 : i32
    %15 = tpu.assume_multiple %14, 8 : i32
    %c64_i32_4 = arith.constant 64 : i32
    %16 = arith.addi %1, %c64_i32_4 : i32
    %c56_i32 = arith.constant 56 : i32
    %17 = arith.minsi %16, %c56_i32 : i32
    %18 = tpu.assume_multiple %17, 8 : i32
    %c0_i32_5 = arith.constant 0 : i32
    %19 = arith.cmpi sgt, %arg1, %c0_i32_5 : i32
    %c0_6 = arith.constant 0 : index
    %20 = arith.index_cast %15 : i32 to index
    %c0_7 = arith.constant 0 : index
    %21 = vector.load %arg3[%c0_6, %20, %c0_7] : memref<1x64x32xf32, #tpu.memory_space<vmem>>, vector<1x8x32xf32>
    %22 = vector.shape_cast %21 : vector<1x8x32xf32> to vector<8x32xf32>
    %23 = vector.broadcast %2 : vector<1x32xf32> to vector<8x32xf32>
    %24 = arith.mulf %22, %23 : vector<8x32xf32>
    %25 = vector.broadcast %3 : vector<1x32xf32> to vector<8x32xf32>
    %26 = arith.addf %24, %25 : vector<8x32xf32>
    %cst_8 = arith.constant 0.000000e+00 : f32
    %27 = vector.broadcast %cst_8 : f32 to vector<8x32xf32>
    %28 = arith.maximumf %26, %27 : vector<8x32xf32>
    %cst_9 = arith.constant 0.000000e+00 : f32
    %29 = vector.broadcast %cst_9 : f32 to vector<8x32xf32>
    %30 = arith.select %19, %28, %29 : vector<8x32xf32>
    %c0_i32_10 = arith.constant 0 : i32
    %31 = arith.cmpi slt, %arg1, %c0_i32_10 : i32
    %c0_11 = arith.constant 0 : index
    %32 = arith.index_cast %18 : i32 to index
    %c0_12 = arith.constant 0 : index
    %33 = vector.load %arg3[%c0_11, %32, %c0_12] : memref<1x64x32xf32, #tpu.memory_space<vmem>>, vector<1x8x32xf32>
    %34 = vector.shape_cast %33 : vector<1x8x32xf32> to vector<8x32xf32>
    %35 = vector.broadcast %2 : vector<1x32xf32> to vector<8x32xf32>
    %36 = arith.mulf %34, %35 : vector<8x32xf32>
    %37 = vector.broadcast %3 : vector<1x32xf32> to vector<8x32xf32>
    %38 = arith.addf %36, %37 : vector<8x32xf32>
    %cst_13 = arith.constant 0.000000e+00 : f32
    %39 = vector.broadcast %cst_13 : f32 to vector<8x32xf32>
    %40 = arith.maximumf %38, %39 : vector<8x32xf32>
    %cst_14 = arith.constant 0.000000e+00 : f32
    %41 = vector.broadcast %cst_14 : f32 to vector<8x32xf32>
    %42 = arith.select %31, %40, %41 : vector<8x32xf32>
    %43 = tpu.concatenate %30, %12, %42 in 0 : vector<8x32xf32>, vector<64x32xf32>, vector<8x32xf32> -> vector<80x32xf32>
    %44 = tpu.iota {dimensions = array<i32: 0>} : vector<80x1xi32>
    %c8_i32_15 = arith.constant 8 : i32
    %c0_i32_16 = arith.constant 0 : i32
    %45 = arith.cmpi eq, %c8_i32_15, %c0_i32_16 : i32
    %c1_i32 = arith.constant 1 : i32
    %46 = arith.select %45, %c1_i32, %c8_i32_15 : i32
    %47 = vector.broadcast %46 : i32 to vector<80x1xi32>
    %48 = arith.remsi %44, %47 : vector<80x1xi32>
    %c0_i32_17 = arith.constant 0 : i32
    %49 = vector.broadcast %c0_i32_17 : i32 to vector<80x1xi32>
    %50 = arith.cmpi ne, %48, %49 : vector<80x1xi32>
    %c0_i32_18 = arith.constant 0 : i32
    %51 = vector.broadcast %c0_i32_18 : i32 to vector<80x1xi32>
    %52 = arith.cmpi slt, %48, %51 : vector<80x1xi32>
    %c0_i32_19 = arith.constant 0 : i32
    %53 = arith.cmpi slt, %46, %c0_i32_19 : i32
    %54 = vector.broadcast %53 : i1 to vector<80x1xi1>
    %55 = vector.broadcast %54 : vector<80x1xi1> to vector<80x1xi1>
    %56 = arith.xori %52, %55 : vector<80x1xi1>
    %57 = arith.andi %56, %50 : vector<80x1xi1>
    %58 = vector.broadcast %46 : i32 to vector<80x1xi32>
    %59 = arith.addi %48, %58 : vector<80x1xi32>
    %60 = arith.select %57, %59, %48 : vector<80x1xi1>, vector<80x1xi32>
    %cst_20 = arith.constant 0.000000e+00 : f32
    %61 = vector.broadcast %cst_20 : f32 to vector<64x32xf32>
    %c1_i32_21 = arith.constant 1 : i32
    %62 = tpu.dynamic_rotate %43 by %c1_i32_21 dim 0 : vector<80x32xf32>, i32 -> vector<80x32xf32>
    %c1_i32_22 = arith.constant 1 : i32
    %63 = vector.broadcast %c1_i32_22 : i32 to vector<80x1xi32>
    %64 = arith.cmpi sge, %60, %63 : vector<80x1xi32>
    %c0_i32_23 = arith.constant 0 : i32
    %65 = arith.sitofp %c0_i32_23 : i32 to f32
    %66 = vector.shape_cast %64 : vector<80x1xi1> to vector<80x1xi1>
    %67 = vector.broadcast %66 : vector<80x1xi1> to vector<80x32xi1>
    %68 = vector.broadcast %65 : f32 to vector<80x32xf32>
    %69 = arith.select %67, %62, %68 : vector<80x32xi1>, vector<80x32xf32>
    %70 = vector.extract_strided_slice %69 {offsets = [0, 0], sizes = [64, 32], strides = [1, 1]} : vector<80x32xf32> to vector<64x32xf32>
    %c0_24 = arith.constant 0 : index
    %c0_25 = arith.constant 0 : index
    %c0_26 = arith.constant 0 : index
    %71 = vector.load %arg4[%c0_24, %c0_25, %c0_26] : memref<9x32x32xf32, #tpu.memory_space<vmem>>, vector<1x32x32xf32>
    %72 = vector.shape_cast %71 : vector<1x32x32xf32> to vector<32x32xf32>
    %cst_27 = arith.constant dense<0.000000e+00> : vector<64x32xf32>
    %73 = tpu.matmul %70, %72, %cst_27 {dimension_numbers = #tpu.dot_dimension_numbers<[1], [0], [0], [1], [0, 0, 1, 1], [], []>} : vector<64x32xf32>, vector<32x32xf32>, vector<64x32xf32> -> vector<64x32xf32>
    %74 = arith.addf %61, %73 : vector<64x32xf32>
    %75 = vector.extract_strided_slice %69 {offsets = [8, 0], sizes = [64, 32], strides = [1, 1]} : vector<80x32xf32> to vector<64x32xf32>
    %c3 = arith.constant 3 : index
    %c0_28 = arith.constant 0 : index
    %c0_29 = arith.constant 0 : index
    %76 = vector.load %arg4[%c3, %c0_28, %c0_29] : memref<9x32x32xf32, #tpu.memory_space<vmem>>, vector<1x32x32xf32>
    %77 = vector.shape_cast %76 : vector<1x32x32xf32> to vector<32x32xf32>
    %cst_30 = arith.constant dense<0.000000e+00> : vector<64x32xf32>
    %78 = tpu.matmul %75, %77, %cst_30 {dimension_numbers = #tpu.dot_dimension_numbers<[1], [0], [0], [1], [0, 0, 1, 1], [], []>} : vector<64x32xf32>, vector<32x32xf32>, vector<64x32xf32> -> vector<64x32xf32>
    %79 = arith.addf %74, %78 : vector<64x32xf32>
    %80 = vector.extract_strided_slice %69 {offsets = [16, 0], sizes = [64, 32], strides = [1, 1]} : vector<80x32xf32> to vector<64x32xf32>
    %c6 = arith.constant 6 : index
    %c0_31 = arith.constant 0 : index
    %c0_32 = arith.constant 0 : index
    %81 = vector.load %arg4[%c6, %c0_31, %c0_32] : memref<9x32x32xf32, #tpu.memory_space<vmem>>, vector<1x32x32xf32>
    %82 = vector.shape_cast %81 : vector<1x32x32xf32> to vector<32x32xf32>
    %cst_33 = arith.constant dense<0.000000e+00> : vector<64x32xf32>
    %83 = tpu.matmul %80, %82, %cst_33 {dimension_numbers = #tpu.dot_dimension_numbers<[1], [0], [0], [1], [0, 0, 1, 1], [], []>} : vector<64x32xf32>, vector<32x32xf32>, vector<64x32xf32> -> vector<64x32xf32>
    %84 = arith.addf %79, %83 : vector<64x32xf32>
    %85 = vector.extract_strided_slice %43 {offsets = [0, 0], sizes = [64, 32], strides = [1, 1]} : vector<80x32xf32> to vector<64x32xf32>
    %c1_34 = arith.constant 1 : index
    %c0_35 = arith.constant 0 : index
    %c0_36 = arith.constant 0 : index
    %86 = vector.load %arg4[%c1_34, %c0_35, %c0_36] : memref<9x32x32xf32, #tpu.memory_space<vmem>>, vector<1x32x32xf32>
    %87 = vector.shape_cast %86 : vector<1x32x32xf32> to vector<32x32xf32>
    %cst_37 = arith.constant dense<0.000000e+00> : vector<64x32xf32>
    %88 = tpu.matmul %85, %87, %cst_37 {dimension_numbers = #tpu.dot_dimension_numbers<[1], [0], [0], [1], [0, 0, 1, 1], [], []>} : vector<64x32xf32>, vector<32x32xf32>, vector<64x32xf32> -> vector<64x32xf32>
    %89 = arith.addf %84, %88 : vector<64x32xf32>
    %90 = vector.extract_strided_slice %43 {offsets = [8, 0], sizes = [64, 32], strides = [1, 1]} : vector<80x32xf32> to vector<64x32xf32>
    %c4 = arith.constant 4 : index
    %c0_38 = arith.constant 0 : index
    %c0_39 = arith.constant 0 : index
    %91 = vector.load %arg4[%c4, %c0_38, %c0_39] : memref<9x32x32xf32, #tpu.memory_space<vmem>>, vector<1x32x32xf32>
    %92 = vector.shape_cast %91 : vector<1x32x32xf32> to vector<32x32xf32>
    %cst_40 = arith.constant dense<0.000000e+00> : vector<64x32xf32>
    %93 = tpu.matmul %90, %92, %cst_40 {dimension_numbers = #tpu.dot_dimension_numbers<[1], [0], [0], [1], [0, 0, 1, 1], [], []>} : vector<64x32xf32>, vector<32x32xf32>, vector<64x32xf32> -> vector<64x32xf32>
    %94 = arith.addf %89, %93 : vector<64x32xf32>
    %95 = vector.extract_strided_slice %43 {offsets = [16, 0], sizes = [64, 32], strides = [1, 1]} : vector<80x32xf32> to vector<64x32xf32>
    %c7 = arith.constant 7 : index
    %c0_41 = arith.constant 0 : index
    %c0_42 = arith.constant 0 : index
    %96 = vector.load %arg4[%c7, %c0_41, %c0_42] : memref<9x32x32xf32, #tpu.memory_space<vmem>>, vector<1x32x32xf32>
    %97 = vector.shape_cast %96 : vector<1x32x32xf32> to vector<32x32xf32>
    %cst_43 = arith.constant dense<0.000000e+00> : vector<64x32xf32>
    %98 = tpu.matmul %95, %97, %cst_43 {dimension_numbers = #tpu.dot_dimension_numbers<[1], [0], [0], [1], [0, 0, 1, 1], [], []>} : vector<64x32xf32>, vector<32x32xf32>, vector<64x32xf32> -> vector<64x32xf32>
    %99 = arith.addf %94, %98 : vector<64x32xf32>
    %c79_i32 = arith.constant 79 : i32
    %100 = tpu.dynamic_rotate %43 by %c79_i32 dim 0 : vector<80x32xf32>, i32 -> vector<80x32xf32>
    %c6_i32 = arith.constant 6 : i32
    %101 = vector.broadcast %c6_i32 : i32 to vector<80x1xi32>
    %102 = arith.cmpi sle, %60, %101 : vector<80x1xi32>
    %c0_i32_44 = arith.constant 0 : i32
    %103 = arith.sitofp %c0_i32_44 : i32 to f32
    %104 = vector.shape_cast %102 : vector<80x1xi1> to vector<80x1xi1>
    %105 = vector.broadcast %104 : vector<80x1xi1> to vector<80x32xi1>
    %106 = vector.broadcast %103 : f32 to vector<80x32xf32>
    %107 = arith.select %105, %100, %106 : vector<80x32xi1>, vector<80x32xf32>
    %108 = vector.extract_strided_slice %107 {offsets = [0, 0], sizes = [64, 32], strides = [1, 1]} : vector<80x32xf32> to vector<64x32xf32>
    %c2 = arith.constant 2 : index
    %c0_45 = arith.constant 0 : index
    %c0_46 = arith.constant 0 : index
    %109 = vector.load %arg4[%c2, %c0_45, %c0_46] : memref<9x32x32xf32, #tpu.memory_space<vmem>>, vector<1x32x32xf32>
    %110 = vector.shape_cast %109 : vector<1x32x32xf32> to vector<32x32xf32>
    %cst_47 = arith.constant dense<0.000000e+00> : vector<64x32xf32>
    %111 = tpu.matmul %108, %110, %cst_47 {dimension_numbers = #tpu.dot_dimension_numbers<[1], [0], [0], [1], [0, 0, 1, 1], [], []>} : vector<64x32xf32>, vector<32x32xf32>, vector<64x32xf32> -> vector<64x32xf32>
    %112 = arith.addf %99, %111 : vector<64x32xf32>
    %113 = vector.extract_strided_slice %107 {offsets = [8, 0], sizes = [64, 32], strides = [1, 1]} : vector<80x32xf32> to vector<64x32xf32>
    %c5 = arith.constant 5 : index
    %c0_48 = arith.constant 0 : index
    %c0_49 = arith.constant 0 : index
    %114 = vector.load %arg4[%c5, %c0_48, %c0_49] : memref<9x32x32xf32, #tpu.memory_space<vmem>>, vector<1x32x32xf32>
    %115 = vector.shape_cast %114 : vector<1x32x32xf32> to vector<32x32xf32>
    %cst_50 = arith.constant dense<0.000000e+00> : vector<64x32xf32>
    %116 = tpu.matmul %113, %115, %cst_50 {dimension_numbers = #tpu.dot_dimension_numbers<[1], [0], [0], [1], [0, 0, 1, 1], [], []>} : vector<64x32xf32>, vector<32x32xf32>, vector<64x32xf32> -> vector<64x32xf32>
    %117 = arith.addf %112, %116 : vector<64x32xf32>
    %118 = vector.extract_strided_slice %107 {offsets = [16, 0], sizes = [64, 32], strides = [1, 1]} : vector<80x32xf32> to vector<64x32xf32>
    %c8 = arith.constant 8 : index
    %c0_51 = arith.constant 0 : index
    %c0_52 = arith.constant 0 : index
    %119 = vector.load %arg4[%c8, %c0_51, %c0_52] : memref<9x32x32xf32, #tpu.memory_space<vmem>>, vector<1x32x32xf32>
    %120 = vector.shape_cast %119 : vector<1x32x32xf32> to vector<32x32xf32>
    %cst_53 = arith.constant dense<0.000000e+00> : vector<64x32xf32>
    %121 = tpu.matmul %118, %120, %cst_53 {dimension_numbers = #tpu.dot_dimension_numbers<[1], [0], [0], [1], [0, 0, 1, 1], [], []>} : vector<64x32xf32>, vector<32x32xf32>, vector<64x32xf32> -> vector<64x32xf32>
    %122 = arith.addf %117, %121 : vector<64x32xf32>
    %cst_54 = arith.constant dense<0.000000e+00> : vector<32xf32>
    %123 = vector.multi_reduction <add>, %122, %cst_54 [0] : vector<64x32xf32> to vector<32xf32>
    %124 = vector.shape_cast %123 : vector<32xf32> to vector<1x32xf32>
    %c0_55 = arith.constant 0 : index
    %c0_56 = arith.constant 0 : index
    %c0_57 = arith.constant 0 : index
    %c0_58 = arith.constant 0 : index
    %125 = vector.load %arg6[%c0_55, %c0_56, %c0_57, %c0_58] : memref<1x1x2x32xf32, #tpu.memory_space<vmem>>, vector<1x1x1x32xf32>
    %126 = vector.shape_cast %125 : vector<1x1x1x32xf32> to vector<1x32xf32>
    %127 = vector.shape_cast %124 : vector<1x32xf32> to vector<1x1x1x32xf32>
    tpu.vector_store %arg6[%c0_55, %c0_56, %c0_57, %c0_58], %127 {strides = array<i32>} : memref<1x1x2x32xf32, #tpu.memory_space<vmem>>, vector<1x1x1x32xf32>,
    %128 = arith.mulf %122, %122 : vector<64x32xf32>
    %cst_59 = arith.constant dense<0.000000e+00> : vector<32xf32>
    %129 = vector.multi_reduction <add>, %128, %cst_59 [0] : vector<64x32xf32> to vector<32xf32>
    %130 = vector.shape_cast %129 : vector<32xf32> to vector<1x32xf32>
    %c0_60 = arith.constant 0 : index
    %c0_61 = arith.constant 0 : index
    %c1_62 = arith.constant 1 : index
    %c0_63 = arith.constant 0 : index
    %131 = vector.load %arg6[%c0_60, %c0_61, %c1_62, %c0_63] : memref<1x1x2x32xf32, #tpu.memory_space<vmem>>, vector<1x1x1x32xf32>
    %132 = vector.shape_cast %131 : vector<1x1x1x32xf32> to vector<1x32xf32>
    %133 = vector.shape_cast %130 : vector<1x32xf32> to vector<1x1x1x32xf32>
    tpu.vector_store %arg6[%c0_60, %c0_61, %c1_62, %c0_63], %133 {strides = array<i32>} : memref<1x1x2x32xf32, #tpu.memory_space<vmem>>, vector<1x1x1x32xf32>,
    %c0_64 = arith.constant 0 : index
    %c0_65 = arith.constant 0 : index
    %c0_66 = arith.constant 0 : index
    %134 = vector.load %arg5[%c0_64, %c0_65, %c0_66] : memref<1x64x32xf32, #tpu.memory_space<vmem>>, vector<1x64x32xf32>
    %135 = vector.shape_cast %134 : vector<1x64x32xf32> to vector<64x32xf32>
    %136 = vector.shape_cast %122 : vector<64x32xf32> to vector<1x64x32xf32>
    tpu.vector_store %arg5[%c0_64, %c0_65, %c0_66], %136 {strides = array<i32>} : memref<1x64x32xf32, #tpu.memory_space<vmem>>, vector<1x64x32xf32>,
    return
  }
  func.func @transform_0(%arg0: i32, %arg1: i32) -> (i32, i32) {
    %c0_i32 = arith.constant 0 : i32
    %c0_i32_0 = arith.constant 0 : i32
    %c0_i32_1 = arith.constant 0 : i32
    return %c0_i32, %c0_i32_0 : i32, i32
  }
  func.func @transform_1(%arg0: i32, %arg1: i32) -> (i32, i32, i32) {
    %c0_i32 = arith.constant 0 : i32
    %c0_i32_0 = arith.constant 0 : i32
    %c0_i32_1 = arith.constant 0 : i32
    return %arg0, %c0_i32, %c0_i32_0 : i32, i32, i32
  }
  func.func @transform_2(%arg0: i32, %arg1: i32) -> (i32, i32, i32) {
    %c0_i32 = arith.constant 0 : i32
    %c0_i32_0 = arith.constant 0 : i32
    %c0_i32_1 = arith.constant 0 : i32
    %c0_i32_2 = arith.constant 0 : i32
    return %c0_i32, %c0_i32_0, %c0_i32_1 : i32, i32, i32
  }
  func.func @transform_3(%arg0: i32, %arg1: i32) -> (i32, i32, i32) {
    %c0_i32 = arith.constant 0 : i32
    %c0_i32_0 = arith.constant 0 : i32
    return %arg0, %arg1, %c0_i32 : i32, i32, i32
  }
  func.func @transform_4(%arg0: i32, %arg1: i32) -> (i32, i32, i32, i32) {
    %c0_i32 = arith.constant 0 : i32
    %c0_i32_0 = arith.constant 0 : i32
    %c0_i32_1 = arith.constant 0 : i32
    return %arg0, %arg1, %c0_i32, %c0_i32_0 : i32, i32, i32, i32
  }
}

module attributes {stable_mosaic.version = 11 : i64} {
  func.func @kernel(%arg0: i32, %arg1: i32, %arg2: memref<2x32xf32, #tpu.memory_space<vmem>>, %arg3: memref<1x64x32xf32, #tpu.memory_space<vmem>>, %arg4: memref<9x32x32xf32, #tpu.memory_space<vmem>>, %arg5: memref<1x64x32xf32, #tpu.memory_space<vmem>>, %arg6: memref<1x64x32xf32, #tpu.memory_space<vmem>>) attributes {dimension_semantics = [#tpu.dimension_semantics<parallel>, #tpu.dimension_semantics<parallel>], iteration_bounds = array<i64: 2, 1>, scalar_prefetch = 0 : i64, scratch_operands = 0 : i64, tpu.core_type = #tpu.core_type<tc>, window_params = [{pipeline_mode = #tpu.pipeline_mode<synchronous>, transform_indices = @transform_0, window_bounds = array<i64: 2, 32>}, {transform_indices = @transform_1, window_bounds = array<i64: 1, 64, 32>}, {pipeline_mode = #tpu.pipeline_mode<synchronous>, transform_indices = @transform_2, window_bounds = array<i64: 9, 32, 32>}, {transform_indices = @transform_3, window_bounds = array<i64: 1, 64, 32>}, {transform_indices = @transform_4, window_bounds = array<i64: 1, 64, 32>}]} {
    %c64_i32 = arith.constant 64 : i32
    %0 = arith.muli %arg1, %c64_i32 : i32
    %1 = tpu.assume_multiple %0, 64 : i32
    %c0 = arith.constant 0 : index
    %c0_0 = arith.constant 0 : index
    %2 = vector.load %arg2[%c0, %c0_0] : memref<2x32xf32, #tpu.memory_space<vmem>>, vector<1x32xf32>
    %c1 = arith.constant 1 : index
    %c0_1 = arith.constant 0 : index
    %3 = vector.load %arg2[%c1, %c0_1] : memref<2x32xf32, #tpu.memory_space<vmem>>, vector<1x32xf32>
    %c0_2 = arith.constant 0 : index
    %4 = arith.index_cast %1 : i32 to index
    %c0_3 = arith.constant 0 : index
    %5 = vector.load %arg3[%c0_2, %4, %c0_3] : memref<1x64x32xf32, #tpu.memory_space<vmem>>, vector<1x64x32xf32>
    %6 = vector.shape_cast %5 : vector<1x64x32xf32> to vector<64x32xf32>
    %7 = vector.broadcast %2 : vector<1x32xf32> to vector<64x32xf32>
    %8 = arith.mulf %6, %7 : vector<64x32xf32>
    %9 = vector.broadcast %3 : vector<1x32xf32> to vector<64x32xf32>
    %10 = arith.addf %8, %9 : vector<64x32xf32>
    %cst = arith.constant 0.000000e+00 : f32
    %11 = vector.broadcast %cst : f32 to vector<64x32xf32>
    %12 = arith.maximumf %10, %11 : vector<64x32xf32>
    %c8_i32 = arith.constant 8 : i32
    %13 = arith.subi %1, %c8_i32 : i32
    %c0_i32 = arith.constant 0 : i32
    %14 = arith.maxsi %13, %c0_i32 : i32
    %15 = tpu.assume_multiple %14, 8 : i32
    %c64_i32_4 = arith.constant 64 : i32
    %16 = arith.addi %1, %c64_i32_4 : i32
    %c56_i32 = arith.constant 56 : i32
    %17 = arith.minsi %16, %c56_i32 : i32
    %18 = tpu.assume_multiple %17, 8 : i32
    %c0_i32_5 = arith.constant 0 : i32
    %19 = arith.cmpi sgt, %arg1, %c0_i32_5 : i32
    %c0_6 = arith.constant 0 : index
    %20 = arith.index_cast %15 : i32 to index
    %c0_7 = arith.constant 0 : index
    %21 = vector.load %arg3[%c0_6, %20, %c0_7] : memref<1x64x32xf32, #tpu.memory_space<vmem>>, vector<1x8x32xf32>
    %22 = vector.shape_cast %21 : vector<1x8x32xf32> to vector<8x32xf32>
    %23 = vector.broadcast %2 : vector<1x32xf32> to vector<8x32xf32>
    %24 = arith.mulf %22, %23 : vector<8x32xf32>
    %25 = vector.broadcast %3 : vector<1x32xf32> to vector<8x32xf32>
    %26 = arith.addf %24, %25 : vector<8x32xf32>
    %cst_8 = arith.constant 0.000000e+00 : f32
    %27 = vector.broadcast %cst_8 : f32 to vector<8x32xf32>
    %28 = arith.maximumf %26, %27 : vector<8x32xf32>
    %cst_9 = arith.constant 0.000000e+00 : f32
    %29 = vector.broadcast %cst_9 : f32 to vector<8x32xf32>
    %30 = arith.select %19, %28, %29 : vector<8x32xf32>
    %c0_i32_10 = arith.constant 0 : i32
    %31 = arith.cmpi slt, %arg1, %c0_i32_10 : i32
    %c0_11 = arith.constant 0 : index
    %32 = arith.index_cast %18 : i32 to index
    %c0_12 = arith.constant 0 : index
    %33 = vector.load %arg3[%c0_11, %32, %c0_12] : memref<1x64x32xf32, #tpu.memory_space<vmem>>, vector<1x8x32xf32>
    %34 = vector.shape_cast %33 : vector<1x8x32xf32> to vector<8x32xf32>
    %35 = vector.broadcast %2 : vector<1x32xf32> to vector<8x32xf32>
    %36 = arith.mulf %34, %35 : vector<8x32xf32>
    %37 = vector.broadcast %3 : vector<1x32xf32> to vector<8x32xf32>
    %38 = arith.addf %36, %37 : vector<8x32xf32>
    %cst_13 = arith.constant 0.000000e+00 : f32
    %39 = vector.broadcast %cst_13 : f32 to vector<8x32xf32>
    %40 = arith.maximumf %38, %39 : vector<8x32xf32>
    %cst_14 = arith.constant 0.000000e+00 : f32
    %41 = vector.broadcast %cst_14 : f32 to vector<8x32xf32>
    %42 = arith.select %31, %40, %41 : vector<8x32xf32>
    %43 = tpu.concatenate %30, %12, %42 in 0 : vector<8x32xf32>, vector<64x32xf32>, vector<8x32xf32> -> vector<80x32xf32>
    %44 = tpu.iota {dimensions = array<i32: 0>} : vector<80x1xi32>
    %c8_i32_15 = arith.constant 8 : i32
    %c0_i32_16 = arith.constant 0 : i32
    %45 = arith.cmpi eq, %c8_i32_15, %c0_i32_16 : i32
    %c1_i32 = arith.constant 1 : i32
    %46 = arith.select %45, %c1_i32, %c8_i32_15 : i32
    %47 = vector.broadcast %46 : i32 to vector<80x1xi32>
    %48 = arith.remsi %44, %47 : vector<80x1xi32>
    %c0_i32_17 = arith.constant 0 : i32
    %49 = vector.broadcast %c0_i32_17 : i32 to vector<80x1xi32>
    %50 = arith.cmpi ne, %48, %49 : vector<80x1xi32>
    %c0_i32_18 = arith.constant 0 : i32
    %51 = vector.broadcast %c0_i32_18 : i32 to vector<80x1xi32>
    %52 = arith.cmpi slt, %48, %51 : vector<80x1xi32>
    %c0_i32_19 = arith.constant 0 : i32
    %53 = arith.cmpi slt, %46, %c0_i32_19 : i32
    %54 = vector.broadcast %53 : i1 to vector<80x1xi1>
    %55 = vector.broadcast %54 : vector<80x1xi1> to vector<80x1xi1>
    %56 = arith.xori %52, %55 : vector<80x1xi1>
    %57 = arith.andi %56, %50 : vector<80x1xi1>
    %58 = vector.broadcast %46 : i32 to vector<80x1xi32>
    %59 = arith.addi %48, %58 : vector<80x1xi32>
    %60 = arith.select %57, %59, %48 : vector<80x1xi1>, vector<80x1xi32>
    %cst_20 = arith.constant 0.000000e+00 : f32
    %61 = vector.broadcast %cst_20 : f32 to vector<64x32xf32>
    %c1_i32_21 = arith.constant 1 : i32
    %62 = tpu.dynamic_rotate %43 by %c1_i32_21 dim 0 : vector<80x32xf32>, i32 -> vector<80x32xf32>
    %c1_i32_22 = arith.constant 1 : i32
    %63 = vector.broadcast %c1_i32_22 : i32 to vector<80x1xi32>
    %64 = arith.cmpi sge, %60, %63 : vector<80x1xi32>
    %c0_i32_23 = arith.constant 0 : i32
    %65 = arith.sitofp %c0_i32_23 : i32 to f32
    %66 = vector.shape_cast %64 : vector<80x1xi1> to vector<80x1xi1>
    %67 = vector.broadcast %66 : vector<80x1xi1> to vector<80x32xi1>
    %68 = vector.broadcast %65 : f32 to vector<80x32xf32>
    %69 = arith.select %67, %62, %68 : vector<80x32xi1>, vector<80x32xf32>
    %70 = vector.extract_strided_slice %69 {offsets = [0, 0], sizes = [64, 32], strides = [1, 1]} : vector<80x32xf32> to vector<64x32xf32>
    %c0_24 = arith.constant 0 : index
    %c0_25 = arith.constant 0 : index
    %c0_26 = arith.constant 0 : index
    %71 = vector.load %arg4[%c0_24, %c0_25, %c0_26] : memref<9x32x32xf32, #tpu.memory_space<vmem>>, vector<1x32x32xf32>
    %72 = vector.shape_cast %71 : vector<1x32x32xf32> to vector<32x32xf32>
    %cst_27 = arith.constant dense<0.000000e+00> : vector<64x32xf32>
    %73 = tpu.matmul %70, %72, %cst_27 {dimension_numbers = #tpu.dot_dimension_numbers<[1], [0], [0], [1], [0, 0, 1, 1], [], []>} : vector<64x32xf32>, vector<32x32xf32>, vector<64x32xf32> -> vector<64x32xf32>
    %74 = arith.addf %61, %73 : vector<64x32xf32>
    %75 = vector.extract_strided_slice %69 {offsets = [8, 0], sizes = [64, 32], strides = [1, 1]} : vector<80x32xf32> to vector<64x32xf32>
    %c3 = arith.constant 3 : index
    %c0_28 = arith.constant 0 : index
    %c0_29 = arith.constant 0 : index
    %76 = vector.load %arg4[%c3, %c0_28, %c0_29] : memref<9x32x32xf32, #tpu.memory_space<vmem>>, vector<1x32x32xf32>
    %77 = vector.shape_cast %76 : vector<1x32x32xf32> to vector<32x32xf32>
    %cst_30 = arith.constant dense<0.000000e+00> : vector<64x32xf32>
    %78 = tpu.matmul %75, %77, %cst_30 {dimension_numbers = #tpu.dot_dimension_numbers<[1], [0], [0], [1], [0, 0, 1, 1], [], []>} : vector<64x32xf32>, vector<32x32xf32>, vector<64x32xf32> -> vector<64x32xf32>
    %79 = arith.addf %74, %78 : vector<64x32xf32>
    %80 = vector.extract_strided_slice %69 {offsets = [16, 0], sizes = [64, 32], strides = [1, 1]} : vector<80x32xf32> to vector<64x32xf32>
    %c6 = arith.constant 6 : index
    %c0_31 = arith.constant 0 : index
    %c0_32 = arith.constant 0 : index
    %81 = vector.load %arg4[%c6, %c0_31, %c0_32] : memref<9x32x32xf32, #tpu.memory_space<vmem>>, vector<1x32x32xf32>
    %82 = vector.shape_cast %81 : vector<1x32x32xf32> to vector<32x32xf32>
    %cst_33 = arith.constant dense<0.000000e+00> : vector<64x32xf32>
    %83 = tpu.matmul %80, %82, %cst_33 {dimension_numbers = #tpu.dot_dimension_numbers<[1], [0], [0], [1], [0, 0, 1, 1], [], []>} : vector<64x32xf32>, vector<32x32xf32>, vector<64x32xf32> -> vector<64x32xf32>
    %84 = arith.addf %79, %83 : vector<64x32xf32>
    %85 = vector.extract_strided_slice %43 {offsets = [0, 0], sizes = [64, 32], strides = [1, 1]} : vector<80x32xf32> to vector<64x32xf32>
    %c1_34 = arith.constant 1 : index
    %c0_35 = arith.constant 0 : index
    %c0_36 = arith.constant 0 : index
    %86 = vector.load %arg4[%c1_34, %c0_35, %c0_36] : memref<9x32x32xf32, #tpu.memory_space<vmem>>, vector<1x32x32xf32>
    %87 = vector.shape_cast %86 : vector<1x32x32xf32> to vector<32x32xf32>
    %cst_37 = arith.constant dense<0.000000e+00> : vector<64x32xf32>
    %88 = tpu.matmul %85, %87, %cst_37 {dimension_numbers = #tpu.dot_dimension_numbers<[1], [0], [0], [1], [0, 0, 1, 1], [], []>} : vector<64x32xf32>, vector<32x32xf32>, vector<64x32xf32> -> vector<64x32xf32>
    %89 = arith.addf %84, %88 : vector<64x32xf32>
    %90 = vector.extract_strided_slice %43 {offsets = [8, 0], sizes = [64, 32], strides = [1, 1]} : vector<80x32xf32> to vector<64x32xf32>
    %c4 = arith.constant 4 : index
    %c0_38 = arith.constant 0 : index
    %c0_39 = arith.constant 0 : index
    %91 = vector.load %arg4[%c4, %c0_38, %c0_39] : memref<9x32x32xf32, #tpu.memory_space<vmem>>, vector<1x32x32xf32>
    %92 = vector.shape_cast %91 : vector<1x32x32xf32> to vector<32x32xf32>
    %cst_40 = arith.constant dense<0.000000e+00> : vector<64x32xf32>
    %93 = tpu.matmul %90, %92, %cst_40 {dimension_numbers = #tpu.dot_dimension_numbers<[1], [0], [0], [1], [0, 0, 1, 1], [], []>} : vector<64x32xf32>, vector<32x32xf32>, vector<64x32xf32> -> vector<64x32xf32>
    %94 = arith.addf %89, %93 : vector<64x32xf32>
    %95 = vector.extract_strided_slice %43 {offsets = [16, 0], sizes = [64, 32], strides = [1, 1]} : vector<80x32xf32> to vector<64x32xf32>
    %c7 = arith.constant 7 : index
    %c0_41 = arith.constant 0 : index
    %c0_42 = arith.constant 0 : index
    %96 = vector.load %arg4[%c7, %c0_41, %c0_42] : memref<9x32x32xf32, #tpu.memory_space<vmem>>, vector<1x32x32xf32>
    %97 = vector.shape_cast %96 : vector<1x32x32xf32> to vector<32x32xf32>
    %cst_43 = arith.constant dense<0.000000e+00> : vector<64x32xf32>
    %98 = tpu.matmul %95, %97, %cst_43 {dimension_numbers = #tpu.dot_dimension_numbers<[1], [0], [0], [1], [0, 0, 1, 1], [], []>} : vector<64x32xf32>, vector<32x32xf32>, vector<64x32xf32> -> vector<64x32xf32>
    %99 = arith.addf %94, %98 : vector<64x32xf32>
    %c79_i32 = arith.constant 79 : i32
    %100 = tpu.dynamic_rotate %43 by %c79_i32 dim 0 : vector<80x32xf32>, i32 -> vector<80x32xf32>
    %c6_i32 = arith.constant 6 : i32
    %101 = vector.broadcast %c6_i32 : i32 to vector<80x1xi32>
    %102 = arith.cmpi sle, %60, %101 : vector<80x1xi32>
    %c0_i32_44 = arith.constant 0 : i32
    %103 = arith.sitofp %c0_i32_44 : i32 to f32
    %104 = vector.shape_cast %102 : vector<80x1xi1> to vector<80x1xi1>
    %105 = vector.broadcast %104 : vector<80x1xi1> to vector<80x32xi1>
    %106 = vector.broadcast %103 : f32 to vector<80x32xf32>
    %107 = arith.select %105, %100, %106 : vector<80x32xi1>, vector<80x32xf32>
    %108 = vector.extract_strided_slice %107 {offsets = [0, 0], sizes = [64, 32], strides = [1, 1]} : vector<80x32xf32> to vector<64x32xf32>
    %c2 = arith.constant 2 : index
    %c0_45 = arith.constant 0 : index
    %c0_46 = arith.constant 0 : index
    %109 = vector.load %arg4[%c2, %c0_45, %c0_46] : memref<9x32x32xf32, #tpu.memory_space<vmem>>, vector<1x32x32xf32>
    %110 = vector.shape_cast %109 : vector<1x32x32xf32> to vector<32x32xf32>
    %cst_47 = arith.constant dense<0.000000e+00> : vector<64x32xf32>
    %111 = tpu.matmul %108, %110, %cst_47 {dimension_numbers = #tpu.dot_dimension_numbers<[1], [0], [0], [1], [0, 0, 1, 1], [], []>} : vector<64x32xf32>, vector<32x32xf32>, vector<64x32xf32> -> vector<64x32xf32>
    %112 = arith.addf %99, %111 : vector<64x32xf32>
    %113 = vector.extract_strided_slice %107 {offsets = [8, 0], sizes = [64, 32], strides = [1, 1]} : vector<80x32xf32> to vector<64x32xf32>
    %c5 = arith.constant 5 : index
    %c0_48 = arith.constant 0 : index
    %c0_49 = arith.constant 0 : index
    %114 = vector.load %arg4[%c5, %c0_48, %c0_49] : memref<9x32x32xf32, #tpu.memory_space<vmem>>, vector<1x32x32xf32>
    %115 = vector.shape_cast %114 : vector<1x32x32xf32> to vector<32x32xf32>
    %cst_50 = arith.constant dense<0.000000e+00> : vector<64x32xf32>
    %116 = tpu.matmul %113, %115, %cst_50 {dimension_numbers = #tpu.dot_dimension_numbers<[1], [0], [0], [1], [0, 0, 1, 1], [], []>} : vector<64x32xf32>, vector<32x32xf32>, vector<64x32xf32> -> vector<64x32xf32>
    %117 = arith.addf %112, %116 : vector<64x32xf32>
    %118 = vector.extract_strided_slice %107 {offsets = [16, 0], sizes = [64, 32], strides = [1, 1]} : vector<80x32xf32> to vector<64x32xf32>
    %c8 = arith.constant 8 : index
    %c0_51 = arith.constant 0 : index
    %c0_52 = arith.constant 0 : index
    %119 = vector.load %arg4[%c8, %c0_51, %c0_52] : memref<9x32x32xf32, #tpu.memory_space<vmem>>, vector<1x32x32xf32>
    %120 = vector.shape_cast %119 : vector<1x32x32xf32> to vector<32x32xf32>
    %cst_53 = arith.constant dense<0.000000e+00> : vector<64x32xf32>
    %121 = tpu.matmul %118, %120, %cst_53 {dimension_numbers = #tpu.dot_dimension_numbers<[1], [0], [0], [1], [0, 0, 1, 1], [], []>} : vector<64x32xf32>, vector<32x32xf32>, vector<64x32xf32> -> vector<64x32xf32>
    %122 = arith.addf %117, %121 : vector<64x32xf32>
    %c0_54 = arith.constant 0 : index
    %c0_55 = arith.constant 0 : index
    %c0_56 = arith.constant 0 : index
    %123 = vector.load %arg5[%c0_54, %c0_55, %c0_56] : memref<1x64x32xf32, #tpu.memory_space<vmem>>, vector<1x64x32xf32>
    %124 = vector.shape_cast %123 : vector<1x64x32xf32> to vector<64x32xf32>
    %125 = arith.addf %122, %124 : vector<64x32xf32>
    %c0_57 = arith.constant 0 : index
    %c0_58 = arith.constant 0 : index
    %c0_59 = arith.constant 0 : index
    %126 = vector.load %arg6[%c0_57, %c0_58, %c0_59] : memref<1x64x32xf32, #tpu.memory_space<vmem>>, vector<1x64x32xf32>
    %127 = vector.shape_cast %126 : vector<1x64x32xf32> to vector<64x32xf32>
    %128 = vector.shape_cast %125 : vector<64x32xf32> to vector<1x64x32xf32>
    tpu.vector_store %arg6[%c0_57, %c0_58, %c0_59], %128 {strides = array<i32>} : memref<1x64x32xf32, #tpu.memory_space<vmem>>, vector<1x64x32xf32>,
    return
  }
  func.func @transform_0(%arg0: i32, %arg1: i32) -> (i32, i32) {
    %c0_i32 = arith.constant 0 : i32
    %c0_i32_0 = arith.constant 0 : i32
    %c0_i32_1 = arith.constant 0 : i32
    return %c0_i32, %c0_i32_0 : i32, i32
  }
  func.func @transform_1(%arg0: i32, %arg1: i32) -> (i32, i32, i32) {
    %c0_i32 = arith.constant 0 : i32
    %c0_i32_0 = arith.constant 0 : i32
    %c0_i32_1 = arith.constant 0 : i32
    return %arg0, %c0_i32, %c0_i32_0 : i32, i32, i32
  }
  func.func @transform_2(%arg0: i32, %arg1: i32) -> (i32, i32, i32) {
    %c0_i32 = arith.constant 0 : i32
    %c0_i32_0 = arith.constant 0 : i32
    %c0_i32_1 = arith.constant 0 : i32
    %c0_i32_2 = arith.constant 0 : i32
    return %c0_i32, %c0_i32_0, %c0_i32_1 : i32, i32, i32
  }
  func.func @transform_3(%arg0: i32, %arg1: i32) -> (i32, i32, i32) {
    %c0_i32 = arith.constant 0 : i32
    %c0_i32_0 = arith.constant 0 : i32
    return %arg0, %arg1, %c0_i32 : i32, i32, i32
  }
  func.func @transform_4(%arg0: i32, %arg1: i32) -> (i32, i32, i32) {
    %c0_i32 = arith.constant 0 : i32
    %c0_i32_0 = arith.constant 0 : i32
    return %arg0, %arg1, %c0_i32 : i32, i32, i32
  }
}

</mosaic_0001>

<bundles_post_ra>
// kernel: tile.23
= control target key start
LH: loop header
LB: loop body
LE: loop exit
PB: predicated region body
PF: predicated region fallthrough
CT: control target
= control target key end

     0   :  { %s22_s0 = inlined_call_operand.vmem [shape: f32[4], index: 0, kind: input, shape index: {}]   ;;  %s23_s1 = inlined_call_operand.vmem [shape: f32[8,4], index: 1, kind: output, shape index: {}]  }
   0x1   :  { %v4_v0 = vld [vmem:[%s22_s0] ss:$0 sm:$0xff] }
   0x2   :  { %5 = vst [vmem:[%s23_s1] sm:$0xff] %v4_v0 }

// kernel: tile.28
= control target key start
LH: loop header
LB: loop body
LE: loop exit
PB: predicated region body
PF: predicated region fallthrough
CT: control target
= control target key end

     0   :  { %s67_s10 = smov 28   ;;  %s68_s11 = smov 20   ;;  %vm3_vm0 = vcmask 31744   ;;  %vm9_vm1 = vcmask 261344   ;;  %vm15_vm2 = vcmask 228544   ;;  %vm21_vm3 = vcmask 195744   ;;  %s111_s0 = inlined_call_operand.vmem [shape: f32[8,4], index: 0, kind: input, shape index: {}]   ;;  %s112_s1 = inlined_call_operand.vmem [shape: f32[1,32], index: 1, kind: output, shape index: {}]  }
   0x1   :  { %v53_v0 = vld [vmem:[%s111_s0 + $0x7] sm:$0x1]   ;;  %v55_v1 = vld [vmem:[%s111_s0 + $0x5] sm:$0x1]   ;;  %v54_v2 = vld [vmem:[%s111_s0 + $0x6] sm:$0x1]  }
   0x2   :  { %7 = vrot.lane.b32.xlu0 %v53_v0, %s67_s10  ;;  %19 = vrot.lane.b32.xlu1 %v55_v1, %s68_s11  ;;  %v56_v3 = vld [vmem:[%s111_s0 + $0x4] sm:$0x1]   ;;  %v2_v4 = vld [vmem:[%s111_s0] sm:$0x1]   ;;  %s69_s18 = smov 24   ;;  %s70_s19 = smov 16  }
   0x3   :  { %4 = vst.msk [vmem:[#allocation0] sm:$0x1] %vm3_vm0, %v2_v4   ;;  %v57_v5 = vld [vmem:[%s111_s0 + $0x3] sm:$0x1]   ;;  %v58_v6 = vld [vmem:[%s111_s0 + $0x2] sm:$0x1]  }
   0x4   :  { %s71_s24 = smov 12   ;;  %s72_s25 = smov 8   ;;  %v59_v7 = vld [vmem:[%s111_s0 + $0x1] sm:$0x1]   ;;  %vm27_vm4 = vcmask 162944   ;;  %vm33_vm5 = vcmask 130144  }
   0x5   :  { %s73_s0 = smov 4   ;;  %vm39_vm6 = vcmask 97344   ;;  %vm45_vm7 = vcmask 64544  }
   0x6   :  { %13 = vrot.lane.b32.xlu0 %v54_v2, %s69_s18  ;;  %25 = vrot.lane.b32.xlu1 %v56_v3, %s70_s19 }
   0xa   :  { %31 = vrot.lane.b32.xlu0 %v57_v5, %s71_s24  ;;  %37 = vrot.lane.b32.xlu1 %v58_v6, %s72_s25 }
   0xe   :  { %43 = vrot.lane.b32.xlu0 %v59_v7, %s73_s0 }
  0x74   :  { %v8_v8 = vpop.permute.xlu0 %7   ;;  %v20_v9 = vpop.permute.xlu1 %19  }
  0x75   :  { %10 = vst.msk [vmem:[#allocation0] sm:$0x1] %vm9_vm1, %v8_v8  }
  0x78   :  { %v14_v10 = vpop.permute.xlu0 %13   ;;  %v26_v11 = vpop.permute.xlu1 %25  }
  0x79   :  { %16 = vst.msk [vmem:[#allocation0] sm:$0x1] %vm15_vm2, %v14_v10  }
  0x7a   :  { %22 = vst.msk [vmem:[#allocation0] sm:$0x1] %vm21_vm3, %v20_v9  }
  0x7b   :  { %28 = vst.msk [vmem:[#allocation0] sm:$0x1] %vm27_vm4, %v26_v11  }
  0x7c   :  { %v32_v12 = vpop.permute.xlu0 %31   ;;  %v38_v13 = vpop.permute.xlu1 %37  }
  0x7d   :  { %34 = vst.msk [vmem:[#allocation0] sm:$0x1] %vm33_vm5, %v32_v12  }
  0x7e   :  { %40 = vst.msk [vmem:[#allocation0] sm:$0x1] %vm39_vm6, %v38_v13  }
  0x80   :  { %v44_v14 = vpop.permute.xlu0 %43  }
  0x81   :  { %46 = vst.msk [vmem:[#allocation0] sm:$0x1] %vm45_vm7, %v44_v14  }
  0x88   :  { %v50_v15 = vld [vmem:[#allocation0] sm:$0x1] }
  0x89   :  { %52 = vst [vmem:[%s112_s1] sm:$0x1] %v50_v15 }

// kernel: _lambda_.2
= control target key start
LH: loop header
LB: loop body
LE: loop exit
PB: predicated region body
PF: predicated region fallthrough
CT: control target
= control target key end

     0   :  { %s2508_s15 = smov 0   ;;  %s2510_s16 = smov 0   ;;  %s3099_s0 = inlined_call_operand.vmem [shape: f32[2,32], index: 0, kind: input, shape index: {}]   ;;  %s3100_s1 = inlined_call_operand.vmem [shape: f32[2,64,32], index: 1, kind: input, shape index: {}]   ;;  %s3101_s2 = inlined_call_operand.vmem [shape: f32[9,32,32], index: 2, kind: input, shape index: {}]   ;;  %s3102_s3 = inlined_call_operand.vmem [shape: f32[2,64,32], index: 3, kind: output, shape index: {0}]   ;;  %s3103_s4 = inlined_call_operand.vmem [shape: f32[2,1,2,32], index: 4, kind: output, shape index: {1}]  }
   0x1   :  { %s2512_s17 = smov 0  }
   0x2 LB: > { %s27_s18 = sadd.s32 1, %s2476_s16  ;;  %p1890_p0 = scmp.ge.s32.totalorder %s2480_s17, 1  ;;  %s2480_s17 = sphi %s2512_s17, %s15_s17   ;;  %s2476_s16 = sphi %s2510_s16, %s3121_s16   ;;  %s2472_s15 = sphi %s2508_s15, %s3120_s15  }
   0x3   : > { %p29_p1 = scmp.ge.s32.totalorder %s27_s18, 2  ;;  %p181_p2 = scmp.lt.s32.totalorder %s2480_s17, 3 }
   0x5   : > { %s3123_s18 = smov (%p29_p1, %s27_s18), 0  ;;  %p182_p3 = pnand %p1890_p0, %p181_p2 }
   0x6   : > { %v1942_v0 = vld [vmem:[%s3101_s2 + $0x80] sm:$0xff] (!%p182_p3)  ;;  %v1943_v1 = vld [vmem:[%s3101_s2 + $0x88] sm:$0xff] (!%p182_p3)  ;;  %p218_p4 = scmp.lt.s32.totalorder (!%p182_p3), %s2472_s15, 1  ;;  %v310_v3 = vlaneseq (!%p182_p3)  ;;  %v1944_v6 = vld [vmem:[%s3101_s2 + $0x90] sm:$0xff] (!%p182_p3)  ;;  %vm511_vm0 = vcmask (!%p182_p3), 261120   ;;  %v2482_v26 = vmov (!%p182_p3), 0.0  }
   0x7   : > { %185 = sbr.rel (%p182_p3) target bundleno = 334 (0x14e), region = 32  ;;  %v1899_v2 = vld [vmem:[%s3101_s2 + $0x60] sm:$0xff] (!%p182_p3)  ;;  %v2535_v4 = vpack.c.bf16 (!%p182_p3), %v1943_v1, %v1942_v0  ;;  %v1900_v5 = vld [vmem:[%s3101_s2 + $0x68] sm:$0xff] (!%p182_p3)  ;;  %v1945_v7 = vld [vmem:[%s3101_s2 + $0x98] sm:$0xff] (!%p182_p3)  ;;  %v2603_v27 = vrot.slane (!%p182_p3), %v2482_v26, 7  ;;  %v2796_v0 = vrot.slane (!%p182_p3), %v2482_v26, 1 }
   0x8   : > { %v2293_v8 = vpack.c.bf16 (!%p182_p3), %v1900_v5, %v1899_v2  ;;  %v2546_v9 = vpack.c.bf16 (!%p182_p3), %v1945_v7, %v1944_v6  ;;  %v1901_v10 = vld [vmem:[%s3101_s2 + $0x70] sm:$0xff] (!%p182_p3)  ;;  %v1902_v11 = vld [vmem:[%s3101_s2 + $0x78] sm:$0xff] (!%p182_p3)  ;;  %v2556_v12 = vshrl.u32 (!%p182_p3), %v310_v3, 7  ;;  %v1954_v14 = vld [vmem:[%s3101_s2 + $0xe0] sm:$0xff] (!%p182_p3) }
   0x9   : > { %2326 = vmatprep.subr.bf16.mxu0 (!%p182_p3), %v2535_v4  ;;  %v2297_v13 = vpack.c.bf16 (!%p182_p3), %v1902_v11, %v1901_v10  ;;  %v1955_v15 = vld [vmem:[%s3101_s2 + $0xe8] sm:$0xff] (!%p182_p3)  ;;  %v2570_v16 = vld [vmem:[%s3099_s0] ss:$0 sm:$0xff] (!%p182_p3)  ;;  %v2592_v20 = vld [vmem:[%s3099_s0 + $0x1] ss:$0 sm:$0xff] (!%p182_p3) }
   0xa   : > { %2328 = vmatpush3.bf16.msra.mxu0 (!%p182_p3), %v2535_v4  ;;  %2294 = vmatprep.subr.bf16.mxu1 (!%p182_p3), %v2293_v8  ;;  %v2573_v17 = vadd.s32 (!%p182_p3), 8, %v2556_v12  ;;  %v502_v18 = vld [vmem:[%s3101_s2] sm:$0xff] (!%p182_p3)  ;;  %v503_v19 = vld [vmem:[%s3101_s2 + $0x8] sm:$0xff] (!%p182_p3)  ;;  %v2333_v21 = vpack.c.bf16 (!%p182_p3), %v1955_v15, %v1954_v14  ;;  %v2595_v22 = vadd.s32 (!%p182_p3), 16, %v2556_v12  ;;  %v1956_v23 = vld [vmem:[%s3101_s2 + $0xf0] sm:$0xff] (!%p182_p3)  ;;  %v2609_v30 = vadd.s32 (!%p182_p3), 24, %v2556_v12 }
   0xb   : > { %2296 = vmatpush3.bf16.msra.mxu1 (!%p182_p3), %v2293_v8  ;;  %2330 = vmatprep.subr.bf16.mxu0 (!%p182_p3), %v2546_v9  ;;  %v2605_v28 = vpack.c.bf16 (!%p182_p3), %v503_v19, %v502_v18  ;;  %v1957_v35 = vld [vmem:[%s3101_s2 + $0xf8] sm:$0xff] (!%p182_p3)  ;;  %v2619_v36 = vadd.s32 (!%p182_p3), 32, %v2556_v12  ;;  %vm451_vm1 = vcmp.lt.s32.totalorder (!%p182_p3), %v2556_v12, 1  ;;  %v2627_v40 = vadd.s32 (!%p182_p3), 40, %v2556_v12  ;;  %v504_v56 = vld [vmem:[%s3101_s2 + $0x10] sm:$0xff] (!%p182_p3)  ;;  %v1965_v3 = vld [vmem:[%s3101_s2 + $0x40] sm:$0xff] (!%p182_p3) }
   0xc   : > { %2298 = vmatprep.subr.bf16.mxu1 (!%p182_p3), %v2297_v13  ;;  %v332_v38 = vand.u32 (!%p182_p3), 7, %v2573_v17  ;;  %v339_v44 = vand.u32 (!%p182_p3), 7, %v2595_v22  ;;  %v2337_v46 = vpack.c.bf16 (!%p182_p3), %v1957_v35, %v1956_v23  ;;  %v346_v47 = vand.u32 (!%p182_p3), 7, %v2609_v30  ;;  %v505_v57 = vld [vmem:[%s3101_s2 + $0x18] sm:$0xff] (!%p182_p3)  ;;  %v1966_v5 = vld [vmem:[%s3101_s2 + $0x48] sm:$0xff] (!%p182_p3)  ;;  %v1989_v30 = vld [vmem:[%s3101_s2 + $0x100] sm:$0xff] (!%p182_p3) }
   0xd   : > { %v353_v52 = vand.u32 (!%p182_p3), 7, %v2619_v36  ;;  %v360_v55 = vand.u32 (!%p182_p3), 7, %v2627_v40  ;;  %v2655_v58 = vadd.s32 (!%p182_p3), 48, %v2556_v12  ;;  %v2305_v10 = vpack.c.bf16 (!%p182_p3), %v505_v57, %v504_v56  ;;  %v1920_v35 = vld [vmem:[%s3101_s2 + $0xc8] sm:$0xff] (!%p182_p3) }
   0xe   : > { %s3125_s15 = smov (!%p218_p4, %s2472_s15), 1  ;;  %2332 = vmatpush3.bf16.msra.mxu0 %v2546_v9  ;;  %vm2662_vm2 = vcmp.ge.s32.totalorder %v332_v38, 1  ;;  %vm2669_vm3 = vcmp.ge.s32.totalorder %v339_v44, 1  ;;  %vm2678_vm4 = vcmp.ge.s32.totalorder %v346_v47, 1  ;;  %vm1264_vm9 = vcmp.lt.s32.totalorder %v2556_v12, 7 }
   0xf   : > { %s2003_s13 = sshll.u32 %s3125_s15, 6  ;;  %2300 = vmatpush3.bf16.msra.mxu1 %v2297_v13  ;;  %2334 = vmatprep.subr.bf16.mxu0 %v2333_v21  ;;  %vm2700_vm5 = vcmp.ge.s32.totalorder %v353_v52, 1  ;;  %vm2718_vm6 = vcmp.ge.s32.totalorder %v360_v55, 1  ;;  %vm1276_vm13 = vcmp.le.s32.totalorder %v332_v38, 6  ;;  %vm1277_vm14 = vcmp.le.s32.totalorder %v339_v44, 6  ;;  %v1931_v44 = vld [vmem:[%s3101_s2 + $0x20] sm:$0xff] }
  0x10   : > { %s2587_s26 = scalar_lea.vmem %s3100_s1, %s2003_s13  ;;  %2302 = vmatprep.subr.bf16.mxu1 %v2605_v28  ;;  %vm1278_vm15 = vcmp.le.s32.totalorder %v346_v47, 6  ;;  %v1990_v47 = vld [vmem:[%s3101_s2 + $0x108] sm:$0xff]  ;;  %s3052_s11 = scalar_lea.vmem %s3102_s3, %s2003_s13 }
  0x11   : > { %v244_v24 = vld [vmem:[%s2587_s26] sm:$0xff]  ;;  %v245_v25 = vld [vmem:[%s2587_s26 + $0x8] sm:$0xff]  ;;  %v246_v29 = vld [vmem:[%s2587_s26 + $0x10] sm:$0xff]  ;;  %s1895_s13 = sshll.u32 %s3125_s15, 1 }
  0x12   : > { %v256_v31 = vmul.f32 %v2570_v16, %v244_v24  ;;  %v257_v32 = vmul.f32 %v2570_v16, %v245_v25  ;;  %v258_v33 = vmul.f32 %v2570_v16, %v246_v29  ;;  %v247_v34 = vld [vmem:[%s2587_s26 + $0x18] sm:$0xff]  ;;  %v248_v37 = vld [vmem:[%s2587_s26 + $0x20] sm:$0xff]  ;;  %v249_v11 = vld [vmem:[%s2587_s26 + $0x28] sm:$0xff]  ;;  %v2341_v29 = vpack.c.bf16 %v1966_v5, %v1965_v3  ;;  %s239_s19 = scalar_lea.vmem %s3103_s4, %s1895_s13 }
  0x13   : > { %v259_v39 = vmul.f32 %v2570_v16, %v247_v34  ;;  %v260_v48 = vmul.f32 %v2570_v16, %v248_v37  ;;  %v250_v13 = vld [vmem:[%s2587_s26 + $0x30] sm:$0xff]  ;;  %v1919_v34 = vld [vmem:[%s3101_s2 + $0xc0] sm:$0xff]  ;;  %v1978_v3 = vld [vmem:[%s3101_s2 + $0xa8] sm:$0xff] }
  0x14   : > { %v268_v41 = vadd.f32 %v2592_v20, %v256_v31  ;;  %v269_v42 = vadd.f32 %v2592_v20, %v257_v32  ;;  %v270_v43 = vadd.f32 %v2592_v20, %v258_v33  ;;  %v261_v32 = vmul.f32 %v2570_v16, %v249_v11 }
  0x15   : > { %v271_v45 = vadd.f32 %v2592_v20, %v259_v39  ;;  %v272_v54 = vadd.f32 %v2592_v20, %v260_v48  ;;  %v262_v33 = vmul.f32 %v2570_v16, %v250_v13  ;;  %v2752_v39 = vadd.s32 56, %v2556_v12 }
  0x16   : > { %v2637_v49 = vmax.f32 %v268_v41, 0.0  ;;  %v2639_v50 = vmax.f32 %v269_v42, 0.0  ;;  %v2641_v51 = vmax.f32 %v270_v43, 0.0  ;;  %v2756_v42 = vadd.s32 64, %v2556_v12  ;;  %v1967_v43 = vld [vmem:[%s3101_s2 + $0x50] sm:$0xff] }
  0x17   : > { %v2644_v53 = vmax.f32 %v271_v45, 0.0  ;;  %v2683_v2 = vmax.f32 %v272_v54, 0.0  ;;  %v273_v45 = vadd.f32 %v2592_v20, %v261_v32  ;;  %v274_v48 = vadd.f32 %v2592_v20, %v262_v33 }
  0x18   : > { %2201 = vmatprep.mubr.msk.f32.mxu0 %vm511_vm0, %v2637_v49  ;;  %v442_v59 = vrot.slane %v2637_v49, 7  ;;  %v443_v61 = vrot.slane %v2639_v50, 7  ;;  %v444_v63 = vrot.slane %v2641_v51, 7  ;;  %v374_v54 = vand.u32 7, %v2752_v39  ;;  %v1991_v39 = vld [vmem:[%s3101_s2 + $0x110] sm:$0xff] }
  0x19   : > { %2202 = vmatmul.mubr.msk.f32.vlgmr.msra.gmra.mrb[0].mxu0 %vm511_vm0, %v2639_v50  ;;  %v445_v1 = vrot.slane %v2644_v53, 7  ;;  %v446_v25 = vrot.slane %v2683_v2, 7  ;;  %v2777_v57 = vpack.c.bf16 %v1920_v35, %v1919_v34  ;;  %v2785_v60 = vmax.f32 %v274_v48, 0.0 }
  0x1a   : > { %2336 = vmatpush3.bf16.msra.mxu0 %v2333_v21  ;;  %v460_v6 = vsel %vm451_vm1, %v2603_v27, %v442_v59  ;;  %2204 = vmatprep.mubr.msk.f32.mxu0 %vm511_vm0, %v2641_v51  ;;  %v459_v7 = vsel %vm451_vm1, %v442_v59, %v443_v61  ;;  %v458_v18 = vsel %vm451_vm1, %v443_v61, %v444_v63  ;;  %v251_v21 = vld [vmem:[%s2587_s26 + $0x38] sm:$0xff]  ;;  %v2783_v59 = vmax.f32 %v273_v45, 0.0 }
  0x1b   : > { %v2708_v14 = vsel %vm2662_vm2, %v460_v6, 0.0  ;;  %v2712_v15 = vsel %vm2669_vm3, %v459_v7, 0.0  ;;  %2338 = vmatprep.subr.bf16.mxu0 %v2337_v46  ;;  %v2727_v23 = vsel %vm2678_vm4, %v458_v18, 0.0  ;;  %v457_v24 = vsel %vm451_vm1, %v444_v63, %v445_v1 }
  0x1c   : > { %2121 = vmatprep.mubr.msk.f32.mxu1 %vm511_vm0, %v2708_v14  ;;  %v2738_v31 = vsel %vm2700_vm5, %v457_v24, 0.0  ;;  %v456_v37 = vsel %vm451_vm1, %v445_v1, %v446_v25  ;;  %v263_v41 = vmul.f32 %v2570_v16, %v251_v21  ;;  %v381_v61 = vand.u32 7, %v2756_v42  ;;  %v1977_v1 = vld [vmem:[%s3101_s2 + $0xa0] sm:$0xff] }
  0x1d   : > { %2122 = vmatmul.mubr.msk.f32.vlgmr.msra.gmra.mrb[0].mxu1 %vm511_vm0, %v2712_v15  ;;  %2205 = vmatmul.mubr.msk.f32.gmra.mrb[2].mxu0 %vm511_vm0, %v2644_v53  ;;  %v2770_v16 = vsel %vm2718_vm6, %v456_v37, 0.0  ;;  %v325_v63 = vand.u32 7, %v2556_v12  ;;  %v447_v5 = vrot.slane %v2783_v59, 7  ;;  %v448_v7 = vrot.slane %v2785_v60, 7 }
  0x1e   : > { %2304 = vmatpush3.bf16.msra.mxu1 %v2605_v28  ;;  %2340 = vmatpush3.bf16.msra.mxu0 %v2337_v46  ;;  %v1968_v28 = vld [vmem:[%s3101_s2 + $0x58] sm:$0xff]  ;;  %v367_v46 = vand.u32 7, %v2655_v58  ;;  %v275_v56 = vadd.f32 %v2592_v20, %v263_v41  ;;  %vm469_vm8 = vcmp.ge.s32.totalorder %v374_v54, 1  ;;  %v1255_v8 = vrot.slane %v2637_v49, 1 }
  0x1f   : > { %2124 = vmatprep.mubr.msk.f32.mxu1 %vm511_vm0, %v2727_v23  ;;  %2221 = vmatprep.mubr.msk.f32.mxu0 %vm511_vm0, %v2639_v50  ;;  %v2345_v62 = vpack.c.bf16 %v1968_v28, %v1967_v43  ;;  %v1256_v11 = vrot.slane %v2639_v50, 1  ;;  %v454_v18 = vsel %vm451_vm1, %v447_v5, %v448_v7  ;;  %vm470_vm10 = vcmp.ge.s32.totalorder %v381_v61, 1  ;;  %v1921_v43 = vld [vmem:[%s3101_s2 + $0xd0] sm:$0xff]  ;;  %v1922_v28 = vld [vmem:[%s3101_s2 + $0xd8] sm:$0xff] }
  0x20   : > { %2306 = vmatprep.subr.bf16.mxu1 %v2305_v10  ;;  %2342 = vmatprep.subr.bf16.mxu0 %v2341_v29  ;;  %v2792_v20 = vmax.f32 %v275_v56, 0.0  ;;  %vm2807_vm7 = vcmp.ge.s32.totalorder %v367_v46, 1  ;;  %v2349_v19 = vpack.c.bf16 %v1978_v3, %v1977_v1  ;;  %v2831_v24 = vsel %vm469_vm8, %v454_v18, 0.0  ;;  %v1979_v56 = vld [vmem:[%s3101_s2 + $0xb0] sm:$0xff]  ;;  %v1932_v3 = vld [vmem:[%s3101_s2 + $0x28] sm:$0xff] }
  0x21   : > { %2125 = vmatmul.mubr.msk.f32.gmra.mrb[2].mxu1 %vm511_vm0, %v2738_v31  ;;  %2222 = vmatmul.mubr.msk.f32.vlgmr.msra.gmra.mrb[0].mxu0 %vm511_vm0, %v2641_v51  ;;  %vm2839_vm11 = vcmp.ge.s32.totalorder %v325_v63, 1  ;;  %v1257_v32 = vrot.slane %v2641_v51, 1  ;;  %v1273_v34 = vsel %vm1264_vm9, %v2796_v0, %v1255_v8  ;;  %vm2853_vm12 = vcmp.le.s32.totalorder %v325_v63, 6 }
  0x22   : > { %2127 = vmatprep.mubr.msk.f32.mxu1 %vm511_vm0, %v2770_v16  ;;  %2224 = vmatprep.mubr.msk.f32.mxu0 %vm511_vm0, %v2644_v53  ;;  %v449_v13 = vrot.slane %v2792_v20, 7  ;;  %v492_v37 = vsel %vm2839_vm11, %v2603_v27, 0.0  ;;  %v1272_v41 = vsel %vm1264_vm9, %v1255_v8, %v1256_v11  ;;  %v1305_v45 = vsel %vm2853_vm12, %v1273_v34, 0.0 }
  0x23   : > { %2308 = vmatpush3.bf16.msra.mxu1 %v2305_v10  ;;  %2344 = vmatpush3.bf16.msra.mxu0 %v2341_v29  ;;  %v455_v10 = vsel %vm451_vm1, %v446_v25, %v447_v5  ;;  %v1271_v17 = vsel %vm1264_vm9, %v1256_v11, %v1257_v32  ;;  %v1258_v38 = vrot.slane %v2644_v53, 1  ;;  %v1259_v48 = vrot.slane %v2683_v2, 1  ;;  %v1934_v29 = vld [vmem:[%s3101_s2 + $0x38] sm:$0xff] }
  0x24   : > { %2310 = vmatprep.subr.bf16.mxu1 %v2777_v57  ;;  %2346 = vmatprep.subr.bf16.mxu0 %v2345_v62  ;;  %v2829_v21 = vsel %vm2807_vm7, %v455_v10, 0.0  ;;  %v453_v25 = vsel %vm451_vm1, %v448_v7, %v449_v13  ;;  %v2313_v63 = vpack.c.bf16 %v1922_v28, %v1921_v43  ;;  %v1306_v1 = vsel %vm1276_vm13, %v1272_v41, 0.0 }
  0x25   : > { %2225 = vmatmul.mubr.msk.f32.gmra.mrb[2].mxu0 %vm511_vm0, %v2683_v2  ;;  %2128 = vmatmul.mubr.msk.f32.gmra.mrb[4].mxu1 %vm511_vm0, %v2829_v21  ;;  %v2848_v33 = vsel %vm470_vm10, %v453_v25, 0.0  ;;  %v2893_v22 = vsel %vm1277_vm14, %v1271_v17, 0.0  ;;  %v1270_v5 = vsel %vm1264_vm9, %v1257_v32, %v1258_v38  ;;  %v1260_v6 = vrot.slane %v2783_v59, 1 }
  0x26   : > { %2227 = vmatprep.mubr.msk.f32.mxu0 %vm511_vm0, %v2783_v59  ;;  %2130 = vmatprep.mubr.msk.f32.mxu1 %vm511_vm0, %v2831_v24  ;;  %v1269_v8 = vsel %vm1264_vm9, %v1258_v38, %v1259_v48  ;;  %vm1279_vm2 = vcmp.le.s32.totalorder %v353_v52, 6  ;;  %v2925_v11 = vsel %vm1278_vm15, %v1270_v5, 0.0  ;;  %vm1280_vm3 = vcmp.le.s32.totalorder %v360_v55, 6 }
  0x27   : > { %2348 = vmatpush3.bf16.msra.mxu0 %v2345_v62  ;;  %v1980_v62 = vld [vmem:[%s3101_s2 + $0xb8] sm:$0xff]  ;;  %v2931_v36 = vsel %vm1279_vm2, %v1269_v8, 0.0  ;;  %v1268_v52 = vsel %vm1264_vm9, %v1259_v48, %v1260_v6  ;;  %v1262_v10 = vrot.slane %v2792_v20, 1  ;;  %v2357_v18 = vpack.c.bf16 %v1990_v47, %v1989_v30 }
  0x28   : > { %2350 = vmatprep.subr.bf16.mxu0 %v2349_v19  ;;  %v2353_v7 = vpack.c.bf16 %v1980_v62, %v1979_v56  ;;  %vm1281_vm4 = vcmp.le.s32.totalorder %v367_v46, 6  ;;  %v1310_v55 = vsel %vm1280_vm3, %v1268_v52, 0.0  ;;  %vm1282_vm5 = vcmp.le.s32.totalorder %v374_v54, 6  ;;  %v1933_v46 = vld [vmem:[%s3101_s2 + $0x30] sm:$0xff]  ;;  %v1992_v54 = vld [vmem:[%s3101_s2 + $0x118] sm:$0xff] }
  0x29   : > { %2228 = vmatmul.mubr.msk.f32.gmra.mrb[4].mxu0 %vm511_vm0, %v2785_v60  ;;  %2131 = vmatmul.mubr.msk.f32.gmra.mrb[6].mxu1 %vm511_vm0, %v2848_v33  ;;  %v2321_v32 = vpack.c.bf16 %v1934_v29, %v1933_v46  ;;  %v320_v34 = vadd.s32 72, %v2556_v12  ;;  %v2361_v35 = vpack.c.bf16 %v1992_v54, %v1991_v39  ;;  %vm1283_vm7 = vcmp.le.s32.totalorder %v381_v61, 6 }
  0x2a   : > { %2230 = vmatprep.mubr.msk.f32.mxu0 %vm511_vm0, %v2792_v20  ;;  %2141 = vmatprep.mubr.msk.f32.mxu1 %vm511_vm0, %v492_v37  ;;  %vm1720_vm8 = vcmask 253952  }
  0x2d   : > { %2231 = vmatmul.mubr.f32.gmra.mrb[6].mxu0 %v2482_v26  ;;  %2142 = vmatmul.mubr.msk.f32.vlgmr.msra.gmra.mrb[0].mxu1 %vm511_vm0, %v2708_v14  ;;  %v1261_v14 = vrot.slane %v2785_v60, 1 }
  0x2e   : > { %2241 = vmatprep.mubr.msk.f32.mxu0 %vm511_vm0, %v1305_v45  ;;  %2312 = vmatpush3.bf16.msra.mxu1 %v2777_v57  ;;  %v2317_v57 = vpack.c.bf16 %v1932_v3, %v1931_v44 }
  0x2f   : > { %2144 = vmatprep.mubr.msk.f32.mxu1 %vm511_vm0, %v2712_v15  ;;  %2314 = vmatprep.subr.bf16.mxu1 %v2313_v63  ;;  %v1267_v40 = vsel %vm1264_vm9, %v1260_v6, %v1261_v14  ;;  %v1266_v25 = vsel %vm1264_vm9, %v1261_v14, %v1262_v10 }
  0x30   : > { %v1312_v58 = vsel %vm1282_vm5, %v1266_v25, 0.0 }
  0x31   : > { %2242 = vmatmul.mubr.msk.f32.vlgmr.msra.gmra.mrb[0].mxu0 %vm511_vm0, %v1306_v1  ;;  %2145 = vmatmul.mubr.msk.f32.gmra.mrb[2].mxu1 %vm511_vm0, %v2727_v23 }
  0x32   : > { %2244 = vmatprep.mubr.msk.f32.mxu0 %vm511_vm0, %v2893_v22  ;;  %2352 = vmatpush3.bf16.msra.mxu0 %v2349_v19  ;;  %v1311_v19 = vsel %vm1281_vm4, %v1267_v40, 0.0 }
  0x33   : > { %2354 = vmatprep.subr.bf16.mxu0 %v2353_v7  ;;  %2147 = vmatprep.mubr.msk.f32.mxu1 %vm511_vm0, %v2738_v31 }
  0x34   : > { %2316 = vmatpush3.bf16.msra.mxu1 %v2313_v63 }
  0x35   : > { %2245 = vmatmul.mubr.msk.f32.gmra.mrb[2].mxu0 %vm511_vm0, %v2925_v11  ;;  %2318 = vmatprep.subr.bf16.mxu1 %v2317_v57 }
  0x36   : > { %2247 = vmatprep.mubr.msk.f32.mxu0 %vm511_vm0, %v2931_v36  ;;  %2356 = vmatpush3.bf16.msra.mxu0 %v2353_v7 }
  0x37   : > { %2148 = vmatmul.mubr.msk.f32.gmra.mrb[4].mxu1 %vm511_vm0, %v2770_v16  ;;  %2358 = vmatprep.subr.bf16.mxu0 %v2357_v18 }
  0x38   : > { %2150 = vmatprep.mubr.msk.f32.mxu1 %vm511_vm0, %v2829_v21 }
  0x39   : > { %2248 = vmatmul.mubr.msk.f32.gmra.mrb[4].mxu0 %vm511_vm0, %v1310_v55 }
  0x3a   : > { %2250 = vmatprep.mubr.msk.f32.mxu0 %vm511_vm0, %v1311_v19 }
  0x3b   : > { %2151 = vmatmul.mubr.msk.f32.gmra.mrb[6].mxu1 %vm511_vm0, %v2831_v24 }
  0x3c   : > { %2161 = vmatprep.mubr.msk.f32.mxu1 %vm511_vm0, %v2712_v15  ;;  %v388_v15 = vand.u32 7, %v320_v34 }
  0x3d   : > { %2251 = vmatmul.mubr.msk.f32.gmra.mrb[6].mxu0 %vm511_vm0, %v1312_v58 }
  0x3e   : > { %2261 = vmatprep.mubr.msk.f32.mxu0 %vm511_vm0, %v1306_v1  ;;  %vm471_vm6 = vcmp.ge.s32.totalorder %v388_v15, 1 }
  0x3f   : > { %2162 = vmatmul.mubr.msk.f32.vlgmr.msra.gmra.mrb[0].mxu1 %vm511_vm0, %v2727_v23  ;;  %v452_v23 = vsel %vm451_vm1, %v449_v13, %v2603_v27  ;;  %vm1284_vm1 = vcmp.le.s32.totalorder %v388_v15, 6 }
  0x40   : > { %2320 = vmatpush3.bf16.msra.mxu1 %v2317_v57  ;;  %2164 = vmatprep.mubr.msk.f32.mxu1 %vm511_vm0, %v2738_v31  ;;  %v1265_v31 = vsel %vm1264_vm9, %v1262_v10, %v2796_v0  ;;  %v501_v27 = vsel %vm471_vm6, %v452_v23, 0.0 }
  0x41   : > { %2262 = vmatmul.mubr.msk.f32.vlgmr.msra.gmra.mrb[0].mxu0 %vm511_vm0, %v2893_v22  ;;  %2322 = vmatprep.subr.bf16.mxu1 %v2321_v32 }
  0x42   : > { %2264 = vmatprep.mubr.msk.f32.mxu0 %vm511_vm0, %v2925_v11  ;;  %2360 = vmatpush3.bf16.msra.mxu0 %v2357_v18 }
  0x43   : > { %2165 = vmatmul.mubr.msk.f32.gmra.mrb[2].mxu1 %vm511_vm0, %v2770_v16  ;;  %2362 = vmatprep.subr.bf16.mxu0 %v2361_v35  ;;  %v1313_v16 = vsel %vm1283_vm7, %v1265_v31, 0.0 }
  0x44   : > { %2167 = vmatprep.mubr.msk.f32.mxu1 %vm511_vm0, %v2829_v21  ;;  %2324 = vmatpush3.bf16.msra.mxu1 %v2321_v32 }
  0x45   : > { %2265 = vmatmul.mubr.msk.f32.gmra.mrb[2].mxu0 %vm511_vm0, %v2931_v36  ;;  %2365 = vmatprep.subr.bf16.mxu1 %v2535_v4 }
  0x46   : > { %2267 = vmatprep.mubr.msk.f32.mxu0 %vm511_vm0, %v1310_v55  ;;  %2364 = vmatpush3.bf16.msra.mxu0 %v2361_v35 }
  0x47   : > { %2168 = vmatmul.mubr.msk.f32.gmra.mrb[4].mxu1 %vm511_vm0, %v2831_v24 }
  0x48   : > { %2170 = vmatprep.mubr.msk.f32.mxu1 %vm511_vm0, %v2848_v33 }
  0x49   : > { %2268 = vmatmul.mubr.msk.f32.gmra.mrb[4].mxu0 %vm511_vm0, %v1311_v19 }
  0x4a   : > { %2270 = vmatprep.mubr.msk.f32.mxu0 %vm511_vm0, %v1312_v58 }
  0x4b   : > { %2171 = vmatmul.mubr.msk.f32.gmra.mrb[6].mxu1 %vm511_vm0, %v501_v27 }
  0x4c   : > { %2181 = vmatprep.mubr.f32.mxu1 %v2482_v26 }
  0x4d   : > { %2271 = vmatmul.mubr.msk.f32.gmra.mrb[6].mxu0 %vm511_vm0, %v1313_v16 }
  0x4e   : > { %2281 = vmatprep.mubr.msk.f32.mxu0 %vm511_vm0, %v2893_v22 }
  0x4f   : > { %2182 = vmatmul.mubr.msk.f32.vlgmr.msra.gmra.mrb[0].mxu1 %vm511_vm0, %v2637_v49 }
  0x50   : > { %2367 = vmatpush3.bf16.msra.mxu1 %v2535_v4  ;;  %2184 = vmatprep.mubr.msk.f32.mxu1 %vm511_vm0, %v2639_v50  ;;  %v1314_v4 = vsel %vm1284_vm1, %v2796_v0, 0.0 }
  0x51   : > { %2282 = vmatmul.mubr.msk.f32.vlgmr.msra.gmra.mrb[0].mxu0 %vm511_vm0, %v2925_v11  ;;  %2366 = vmatprep.subr.bf16.mxu1 %v2546_v9 }
  0x52   : > { %2284 = vmatprep.mubr.msk.f32.mxu0 %vm511_vm0, %v2931_v36 }
  0x53   : > { %2185 = vmatmul.mubr.msk.f32.gmra.mrb[2].mxu1 %vm511_vm0, %v2641_v51 }
  0x54   : > { %2187 = vmatprep.mubr.msk.f32.mxu1 %vm511_vm0, %v2644_v53  ;;  %2368 = vmatpush3.bf16.msra.mxu1 %v2546_v9 }
  0x55   : > { %2285 = vmatmul.mubr.msk.f32.gmra.mrb[2].mxu0 %vm511_vm0, %v1310_v55 }
  0x56   : > { %2287 = vmatprep.mubr.msk.f32.mxu0 %vm511_vm0, %v1311_v19 }
  0x57   : > { %2188 = vmatmul.mubr.msk.f32.gmra.mrb[4].mxu1 %vm511_vm0, %v2683_v2 }
  0x58   : > { %2190 = vmatprep.mubr.msk.f32.mxu1 %vm511_vm0, %v2783_v59 }
  0x59   : > { %2288 = vmatmul.mubr.msk.f32.gmra.mrb[4].mxu0 %vm511_vm0, %v1312_v58 }
  0x5a   : > { %2290 = vmatprep.mubr.msk.f32.mxu0 %vm511_vm0, %v1313_v16 }
  0x5b   : > { %2191 = vmatmul.mubr.msk.f32.gmra.mrb[6].mxu1 %vm511_vm0, %v2785_v60 }
  0x5c   : > { %2207 = vmatprep.mubr.msk.f32.mxu1 %vm511_vm0, %v2683_v2 }
  0x5d   : > { %2291 = vmatmul.mubr.msk.f32.gmra.mrb[6].mxu0 %vm511_vm0, %v1314_v4 }
  0x5f   : > { %2208 = vmatmul.mubr.msk.f32.vlgmr.msra.gmra.mrb[4].mxu1 %vm511_vm0, %v2783_v59 }
  0x60   : > { %2210 = vmatprep.mubr.msk.f32.mxu1 %vm511_vm0, %v2785_v60 }
  0x63   : > { %2211 = vmatmul.mubr.msk.f32.gmra.mrb[6].mxu1 %vm511_vm0, %v2792_v20 }
 0x122   : > { %v2183_v9 = vpop.f32.mrb[0].mxu1 }
 0x123   : > { %v965_v12 = vpop.f32.mrb[1].mxu1 }
 0x124   : > { %v2283_v26 = vpop.f32.mrb[0].mxu0 }
 0x125   : > { %v2369_v49 = vadd.f32 %v2283_v26, %v2183_v9  ;;  %v1652_v50 = vpop.f32.mrb[1].mxu0 }
 0x126   : > { %v2186_v51 = vpop.f32.mrb[2].mxu1  ;;  %v2370_v53 = vadd.f32 %v1652_v50, %v965_v12 }
 0x127   : > { %v1700_v2 = vsel %vm511_vm0, %v2369_v49, 0.0  ;;  %v1723_v42 = vmul.f32 %v2369_v49, %v2369_v49  ;;  %1753 = vst.msk [vmem:[%s3052_s11 + $0x8] sm:$0xff] %vm511_vm0, %v2369_v49  ;;  %v975_v59 = vpop.f32.mrb[3].mxu1 }
 0x128   : > { %v1699_v60 = vsel %vm511_vm0, %v2370_v53, 0.0  ;;  %v1722_v61 = vmul.f32 %v2370_v53, %v2370_v53  ;;  %1752 = vst.msk [vmem:[%s3052_s11] sm:$0xff] %vm511_vm0, %v2370_v53  ;;  %v2286_v20 = vpop.f32.mrb[2].mxu0 }
 0x129   : > { %v1731_v0 = vsel %vm511_vm0, %v1723_v42, 0.0  ;;  %v1701_v13 = vadd.f32 %v1700_v2, %v1699_v60  ;;  %v2371_v21 = vadd.f32 %v2286_v20, %v2186_v51  ;;  %v1662_v24 = vpop.f32.mrb[3].mxu0 }
 0x12a   : > { %v1730_v33 = vsel %vm511_vm0, %v1722_v61, 0.0  ;;  %v2372_v37 = vadd.f32 %v1662_v24, %v975_v59 }
 0x12b   : > { %v1732_v41 = vadd.f32 %v1731_v0, %v1730_v33  ;;  %1755 = vst.msk [vmem:[%s3052_s11 + $0x18] sm:$0xff] %vm511_vm0, %v2371_v21  ;;  %v1725_v43 = vmul.f32 %v2371_v21, %v2371_v21  ;;  %v1704_v56 = vsel %vm511_vm0, %v2371_v21, 0.0 }
 0x12c   : > { %v1702_v28 = vsel %vm511_vm0, %v2372_v37, 0.0  ;;  %v1724_v45 = vmul.f32 %v2372_v37, %v2372_v37  ;;  %1754 = vst.msk [vmem:[%s3052_s11 + $0x10] sm:$0xff] %vm511_vm0, %v2372_v37  ;;  %v2289_v17 = vpop.f32.mrb[4].mxu0 }
 0x12d   : > { %v1703_v38 = vadd.f32 %v1702_v28, %v1701_v13  ;;  %v1672_v48 = vpop.f32.mrb[5].mxu0  ;;  %v1735_v22 = vsel %vm511_vm0, %v1725_v43, 0.0 }
 0x12e   : > { %v1733_v62 = vsel %vm511_vm0, %v1724_v45, 0.0 }
 0x12f   : > { %v1734_v63 = vadd.f32 %v1733_v62, %v1732_v41  ;;  %v1705_v1 = vadd.f32 %v1704_v56, %v1703_v38 }
 0x130   : > { %v2292_v44 = vpop.f32.mrb[6].mxu0 }
 0x131   : > { %v1736_v3 = vadd.f32 %v1735_v22, %v1734_v63  ;;  %v1682_v5 = vpop.f32.mrb[7].mxu0 }
 0x132   : > { %v2209_v6 = vpop.f32.mrb[4].mxu1 }
 0x133   : > { %v2373_v7 = vadd.f32 %v2289_v17, %v2209_v6  ;;  %v1106_v8 = vpop.f32.mrb[5].mxu1 }
 0x134   : > { %v2374_v14 = vadd.f32 %v1672_v48, %v1106_v8 }
 0x135   : > { %1757 = vst.msk [vmem:[%s3052_s11 + $0x28] sm:$0xff] %vm511_vm0, %v2373_v7  ;;  %v1727_v30 = vmul.f32 %v2373_v7, %v2373_v7  ;;  %v1708_v18 = vsel %vm511_vm0, %v2373_v7, 0.0 }
 0x136   : > { %v1706_v47 = vsel %vm511_vm0, %v2374_v14, 0.0  ;;  %v1726_v57 = vmul.f32 %v2374_v14, %v2374_v14  ;;  %1756 = vst.msk [vmem:[%s3052_s11 + $0x20] sm:$0xff] %vm511_vm0, %v2374_v14  ;;  %v2212_v11 = vpop.f32.mrb[6].mxu1 }
 0x137   : > { %v1707_v36 = vadd.f32 %v1706_v47, %v1705_v1  ;;  %v2375_v52 = vadd.f32 %v2292_v44, %v2212_v11  ;;  %v1116_v10 = vpop.f32.mrb[7].mxu1  ;;  %v1739_v58 = vsel %vm511_vm0, %v1727_v30, 0.0 }
 0x138   : > { %v1737_v40 = vsel %vm511_vm0, %v1726_v57, 0.0  ;;  %v2376_v55 = vadd.f32 %v1682_v5, %v1116_v10 }
 0x139   : > { %v1738_v19 = vadd.f32 %v1737_v40, %v1736_v3  ;;  %1759 = vst.msk [vmem:[%s3052_s11 + $0x38] sm:$0xff] %vm511_vm0, %v2375_v52  ;;  %v1709_v25 = vadd.f32 %v1708_v18, %v1707_v36  ;;  %v1729_v46 = vmul.f32 %v2375_v52, %v2375_v52  ;;  %v1712_v34 = vsel %vm511_vm0, %v2375_v52, 0.0 }
 0x13a   : > { %v1710_v29 = vsel %vm511_vm0, %v2376_v55, 0.0  ;;  %v1728_v39 = vmul.f32 %v2376_v55, %v2376_v55  ;;  %1758 = vst.msk [vmem:[%s3052_s11 + $0x30] sm:$0xff] %vm511_vm0, %v2376_v55 }
 0x13b   : > { %v1711_v54 = vadd.f32 %v1710_v29, %v1709_v25  ;;  %v1740_v32 = vadd.f32 %v1739_v58, %v1738_v19  ;;  %v1743_v31 = vsel %vm511_vm0, %v1729_v46, 0.0 }
 0x13c   : > { %v1741_v35 = vsel %vm511_vm0, %v1728_v39, 0.0 }
 0x13d   : > { %v1713_v15 = vadd.f32 %v1712_v34, %v1711_v54  ;;  %v1742_v23 = vadd.f32 %v1741_v35, %v1740_v32 }
 0x13f   : > { %v1714_v27 = vrot.slane %v1713_v15, 4  ;;  %v1744_v16 = vadd.f32 %v1743_v31, %v1742_v23 }
 0x141   : > { %v1715_v4 = vadd.f32 %v1714_v27, %v1713_v15  ;;  %v1745_v9 = vrot.slane %v1744_v16, 4 }
 0x143   : > { %v1716_v12 = vrot.slane %v1715_v4, 2  ;;  %v1746_v26 = vadd.f32 %v1745_v9, %v1744_v16 }
 0x145   : > { %v1717_v49 = vadd.f32 %v1716_v12, %v1715_v4  ;;  %v1747_v50 = vrot.slane %v1746_v26, 2 }
 0x147   : > { %v1718_v51 = vrot.slane %v1717_v49, 1  ;;  %v1748_v53 = vadd.f32 %v1747_v50, %v1746_v26 }
 0x149   : > { %v1719_v2 = vadd.f32 %v1718_v51, %v1717_v49  ;;  %v1749_v42 = vrot.slane %v1748_v53, 1 }
 0x14b   : > { %1721 = vst.msk [vmem:[%s239_s19] sm:$0x1] %vm1720_vm8, %v1719_v2  ;;  %v1750_v59 = vadd.f32 %v1749_v42, %v1748_v53 }
 0x14d   : > { %1751 = vst.msk [vmem:[%s239_s19 + $0x1] sm:$0x1] %vm1720_vm8, %v1750_v59 }
 0x14e PF: > { %s15_s17 = sadd.s32 1, %s2480_s17   ;;  %s3120_s15 = smov %s2476_s16 }
 0x14f   : > { %p12_p5 = scmp.ge.s32.totalorder %s15_s17, 4   ;;  %s3121_s16 = smov %s3123_s18 }
 0x151   :  { %14 = sbr.rel (!%p12_p5) target bundleno = 2 (0x2), region = 85 }

// kernel: _lambda_.3
= control target key start
LH: loop header
LB: loop body
LE: loop exit
PB: predicated region body
PF: predicated region fallthrough
CT: control target
= control target key end

     0   :  { %s2467_s15 = smov 0   ;;  %s2469_s16 = smov 0   ;;  %s3049_s0 = inlined_call_operand.vmem [shape: f32[2,32], index: 0, kind: input, shape index: {}]   ;;  %s3050_s1 = inlined_call_operand.vmem [shape: f32[2,64,32], index: 1, kind: input, shape index: {}]   ;;  %s3051_s2 = inlined_call_operand.vmem [shape: f32[9,32,32], index: 2, kind: input, shape index: {}]   ;;  %s3052_s3 = inlined_call_operand.vmem [shape: f32[2,64,32], index: 3, kind: input, shape index: {}]   ;;  %s3053_s4 = inlined_call_operand.vmem [shape: f32[2,64,32], index: 4, kind: output, shape index: {}]  }
   0x1   :  { %s2471_s17 = smov 0  }
   0x2 LB: > { %s26_s18 = sadd.s32 1, %s2435_s16  ;;  %p1847_p0 = scmp.ge.s32.totalorder %s2439_s17, 1  ;;  %s2439_s17 = sphi %s2471_s17, %s14_s17   ;;  %s2435_s16 = sphi %s2469_s16, %s3071_s16   ;;  %s2431_s15 = sphi %s2467_s15, %s3070_s15  }
   0x3   : > { %p28_p1 = scmp.ge.s32.totalorder %s26_s18, 2  ;;  %p193_p2 = scmp.lt.s32.totalorder %s2439_s17, 3 }
   0x5   : > { %s3073_s18 = smov (%p28_p1, %s26_s18), 0  ;;  %p194_p3 = pnand %p1847_p0, %p193_p2 }
   0x6   : > { %v1900_v0 = vld [vmem:[%s3051_s2 + $0x80] sm:$0xff] (!%p194_p3)  ;;  %v1901_v1 = vld [vmem:[%s3051_s2 + $0x88] sm:$0xff] (!%p194_p3)  ;;  %p232_p4 = scmp.lt.s32.totalorder (!%p194_p3), %s2431_s15, 1  ;;  %v327_v3 = vlaneseq (!%p194_p3)  ;;  %v1902_v6 = vld [vmem:[%s3051_s2 + $0x90] sm:$0xff] (!%p194_p3)  ;;  %vm528_vm0 = vcmask (!%p194_p3), 261120   ;;  %v2441_v26 = vmov (!%p194_p3), 0.0  }
   0x7   : > { %197 = sbr.rel (%p194_p3) target bundleno = 317 (0x13d), region = 36  ;;  %v1857_v2 = vld [vmem:[%s3051_s2 + $0x60] sm:$0xff] (!%p194_p3)  ;;  %v2494_v4 = vpack.c.bf16 (!%p194_p3), %v1901_v1, %v1900_v0  ;;  %v1858_v5 = vld [vmem:[%s3051_s2 + $0x68] sm:$0xff] (!%p194_p3)  ;;  %v1903_v7 = vld [vmem:[%s3051_s2 + $0x98] sm:$0xff] (!%p194_p3)  ;;  %v2560_v27 = vrot.slane (!%p194_p3), %v2441_v26, 7  ;;  %v2753_v0 = vrot.slane (!%p194_p3), %v2441_v26, 1 }
   0x8   : > { %v2252_v8 = vpack.c.bf16 (!%p194_p3), %v1858_v5, %v1857_v2  ;;  %v2505_v9 = vpack.c.bf16 (!%p194_p3), %v1903_v7, %v1902_v6  ;;  %v1859_v10 = vld [vmem:[%s3051_s2 + $0x70] sm:$0xff] (!%p194_p3)  ;;  %v1860_v11 = vld [vmem:[%s3051_s2 + $0x78] sm:$0xff] (!%p194_p3)  ;;  %v2513_v12 = vshrl.u32 (!%p194_p3), %v327_v3, 7  ;;  %v1912_v14 = vld [vmem:[%s3051_s2 + $0xe0] sm:$0xff] (!%p194_p3) }
   0x9   : > { %2285 = vmatprep.subr.bf16.mxu0 (!%p194_p3), %v2494_v4  ;;  %v2256_v13 = vpack.c.bf16 (!%p194_p3), %v1860_v11, %v1859_v10  ;;  %v1913_v15 = vld [vmem:[%s3051_s2 + $0xe8] sm:$0xff] (!%p194_p3)  ;;  %v2528_v16 = vld [vmem:[%s3049_s0] ss:$0 sm:$0xff] (!%p194_p3)  ;;  %v2549_v20 = vld [vmem:[%s3049_s0 + $0x1] ss:$0 sm:$0xff] (!%p194_p3) }
   0xa   : > { %2287 = vmatpush3.bf16.msra.mxu0 (!%p194_p3), %v2494_v4  ;;  %2253 = vmatprep.subr.bf16.mxu1 (!%p194_p3), %v2252_v8  ;;  %v2531_v17 = vadd.s32 (!%p194_p3), 8, %v2513_v12  ;;  %v519_v18 = vld [vmem:[%s3051_s2] sm:$0xff] (!%p194_p3)  ;;  %v520_v19 = vld [vmem:[%s3051_s2 + $0x8] sm:$0xff] (!%p194_p3)  ;;  %v2292_v21 = vpack.c.bf16 (!%p194_p3), %v1913_v15, %v1912_v14  ;;  %v2552_v22 = vadd.s32 (!%p194_p3), 16, %v2513_v12  ;;  %v1914_v23 = vld [vmem:[%s3051_s2 + $0xf0] sm:$0xff] (!%p194_p3)  ;;  %v2566_v30 = vadd.s32 (!%p194_p3), 24, %v2513_v12 }
   0xb   : > { %2255 = vmatpush3.bf16.msra.mxu1 (!%p194_p3), %v2252_v8  ;;  %2289 = vmatprep.subr.bf16.mxu0 (!%p194_p3), %v2505_v9  ;;  %v2562_v28 = vpack.c.bf16 (!%p194_p3), %v520_v19, %v519_v18  ;;  %v1915_v35 = vld [vmem:[%s3051_s2 + $0xf8] sm:$0xff] (!%p194_p3)  ;;  %v2576_v36 = vadd.s32 (!%p194_p3), 32, %v2513_v12  ;;  %vm468_vm1 = vcmp.lt.s32.totalorder (!%p194_p3), %v2513_v12, 1  ;;  %v2584_v40 = vadd.s32 (!%p194_p3), 40, %v2513_v12  ;;  %v521_v56 = vld [vmem:[%s3051_s2 + $0x10] sm:$0xff] (!%p194_p3)  ;;  %v1923_v3 = vld [vmem:[%s3051_s2 + $0x40] sm:$0xff] (!%p194_p3) }
   0xc   : > { %2257 = vmatprep.subr.bf16.mxu1 (!%p194_p3), %v2256_v13  ;;  %v349_v38 = vand.u32 (!%p194_p3), 7, %v2531_v17  ;;  %v356_v44 = vand.u32 (!%p194_p3), 7, %v2552_v22  ;;  %v2296_v46 = vpack.c.bf16 (!%p194_p3), %v1915_v35, %v1914_v23  ;;  %v363_v47 = vand.u32 (!%p194_p3), 7, %v2566_v30  ;;  %v522_v57 = vld [vmem:[%s3051_s2 + $0x18] sm:$0xff] (!%p194_p3)  ;;  %v1924_v5 = vld [vmem:[%s3051_s2 + $0x48] sm:$0xff] (!%p194_p3)  ;;  %v1947_v30 = vld [vmem:[%s3051_s2 + $0x100] sm:$0xff] (!%p194_p3) }
   0xd   : > { %v370_v52 = vand.u32 (!%p194_p3), 7, %v2576_v36  ;;  %v377_v55 = vand.u32 (!%p194_p3), 7, %v2584_v40  ;;  %v2612_v58 = vadd.s32 (!%p194_p3), 48, %v2513_v12  ;;  %v2264_v10 = vpack.c.bf16 (!%p194_p3), %v522_v57, %v521_v56  ;;  %v1878_v35 = vld [vmem:[%s3051_s2 + $0xc8] sm:$0xff] (!%p194_p3) }
   0xe   : > { %s3075_s15 = smov (!%p232_p4, %s2431_s15), 1  ;;  %2291 = vmatpush3.bf16.msra.mxu0 %v2505_v9  ;;  %vm2619_vm2 = vcmp.ge.s32.totalorder %v349_v38, 1  ;;  %vm2626_vm3 = vcmp.ge.s32.totalorder %v356_v44, 1  ;;  %vm2635_vm4 = vcmp.ge.s32.totalorder %v363_v47, 1  ;;  %vm1281_vm9 = vcmp.lt.s32.totalorder %v2513_v12, 7 }
   0xf   : > { %s2523_s13 = sshll.u32 %s3075_s15, 6  ;;  %2259 = vmatpush3.bf16.msra.mxu1 %v2256_v13  ;;  %2293 = vmatprep.subr.bf16.mxu0 %v2292_v21  ;;  %vm2657_vm5 = vcmp.ge.s32.totalorder %v370_v52, 1  ;;  %vm2675_vm6 = vcmp.ge.s32.totalorder %v377_v55, 1  ;;  %vm1293_vm13 = vcmp.le.s32.totalorder %v349_v38, 6  ;;  %vm1294_vm14 = vcmp.le.s32.totalorder %v356_v44, 6  ;;  %v1889_v44 = vld [vmem:[%s3051_s2 + $0x20] sm:$0xff] }
  0x10   : > { %s2544_s25 = scalar_lea.vmem %s3050_s1, %s2523_s13  ;;  %2261 = vmatprep.subr.bf16.mxu1 %v2562_v28  ;;  %vm1295_vm15 = vcmp.le.s32.totalorder %v363_v47, 6  ;;  %v1948_v47 = vld [vmem:[%s3051_s2 + $0x108] sm:$0xff]  ;;  %s3008_s8 = scalar_lea.vmem %s3052_s3, %s2523_s13 }
  0x11   : > { %v261_v24 = vld [vmem:[%s2544_s25] sm:$0xff]  ;;  %v262_v25 = vld [vmem:[%s2544_s25 + $0x8] sm:$0xff]  ;;  %v263_v29 = vld [vmem:[%s2544_s25 + $0x10] sm:$0xff]  ;;  %s3016_s11 = scalar_lea.vmem %s3053_s4, %s2523_s13 }
  0x12   : > { %v273_v31 = vmul.f32 %v2528_v16, %v261_v24  ;;  %v274_v32 = vmul.f32 %v2528_v16, %v262_v25  ;;  %v275_v33 = vmul.f32 %v2528_v16, %v263_v29  ;;  %v264_v34 = vld [vmem:[%s2544_s25 + $0x18] sm:$0xff]  ;;  %v265_v37 = vld [vmem:[%s2544_s25 + $0x20] sm:$0xff]  ;;  %v266_v11 = vld [vmem:[%s2544_s25 + $0x28] sm:$0xff]  ;;  %v2300_v29 = vpack.c.bf16 %v1924_v5, %v1923_v3 }
  0x13   : > { %v276_v39 = vmul.f32 %v2528_v16, %v264_v34  ;;  %v277_v48 = vmul.f32 %v2528_v16, %v265_v37  ;;  %v267_v13 = vld [vmem:[%s2544_s25 + $0x30] sm:$0xff]  ;;  %v1877_v34 = vld [vmem:[%s3051_s2 + $0xc0] sm:$0xff]  ;;  %v1936_v3 = vld [vmem:[%s3051_s2 + $0xa8] sm:$0xff] }
  0x14   : > { %v285_v41 = vadd.f32 %v2549_v20, %v273_v31  ;;  %v286_v42 = vadd.f32 %v2549_v20, %v274_v32  ;;  %v287_v43 = vadd.f32 %v2549_v20, %v275_v33  ;;  %v278_v32 = vmul.f32 %v2528_v16, %v266_v11 }
  0x15   : > { %v288_v45 = vadd.f32 %v2549_v20, %v276_v39  ;;  %v289_v54 = vadd.f32 %v2549_v20, %v277_v48  ;;  %v279_v33 = vmul.f32 %v2528_v16, %v267_v13  ;;  %v2709_v39 = vadd.s32 56, %v2513_v12 }
  0x16   : > { %v2594_v49 = vmax.f32 %v285_v41, 0.0  ;;  %v2596_v50 = vmax.f32 %v286_v42, 0.0  ;;  %v2598_v51 = vmax.f32 %v287_v43, 0.0  ;;  %v2713_v42 = vadd.s32 64, %v2513_v12  ;;  %v1925_v43 = vld [vmem:[%s3051_s2 + $0x50] sm:$0xff] }
  0x17   : > { %v2601_v53 = vmax.f32 %v288_v45, 0.0  ;;  %v2640_v2 = vmax.f32 %v289_v54, 0.0  ;;  %v290_v45 = vadd.f32 %v2549_v20, %v278_v32  ;;  %v291_v48 = vadd.f32 %v2549_v20, %v279_v33 }
  0x18   : > { %2160 = vmatprep.mubr.msk.f32.mxu0 %vm528_vm0, %v2594_v49  ;;  %v459_v59 = vrot.slane %v2594_v49, 7  ;;  %v460_v61 = vrot.slane %v2596_v50, 7  ;;  %v461_v63 = vrot.slane %v2598_v51, 7  ;;  %v391_v54 = vand.u32 7, %v2709_v39  ;;  %v1949_v39 = vld [vmem:[%s3051_s2 + $0x110] sm:$0xff] }
  0x19   : > { %2161 = vmatmul.mubr.msk.f32.vlgmr.msra.gmra.mrb[0].mxu0 %vm528_vm0, %v2596_v50  ;;  %v462_v1 = vrot.slane %v2601_v53, 7  ;;  %v463_v25 = vrot.slane %v2640_v2, 7  ;;  %v2734_v57 = vpack.c.bf16 %v1878_v35, %v1877_v34  ;;  %v2742_v60 = vmax.f32 %v291_v48, 0.0 }
  0x1a   : > { %2295 = vmatpush3.bf16.msra.mxu0 %v2292_v21  ;;  %v477_v6 = vsel %vm468_vm1, %v2560_v27, %v459_v59  ;;  %2163 = vmatprep.mubr.msk.f32.mxu0 %vm528_vm0, %v2598_v51  ;;  %v476_v7 = vsel %vm468_vm1, %v459_v59, %v460_v61  ;;  %v475_v18 = vsel %vm468_vm1, %v460_v61, %v461_v63  ;;  %v268_v21 = vld [vmem:[%s2544_s25 + $0x38] sm:$0xff]  ;;  %v2740_v59 = vmax.f32 %v290_v45, 0.0 }
  0x1b   : > { %v2665_v14 = vsel %vm2619_vm2, %v477_v6, 0.0  ;;  %v2669_v15 = vsel %vm2626_vm3, %v476_v7, 0.0  ;;  %2297 = vmatprep.subr.bf16.mxu0 %v2296_v46  ;;  %v2684_v23 = vsel %vm2635_vm4, %v475_v18, 0.0  ;;  %v474_v24 = vsel %vm468_vm1, %v461_v63, %v462_v1 }
  0x1c   : > { %2080 = vmatprep.mubr.msk.f32.mxu1 %vm528_vm0, %v2665_v14  ;;  %v2695_v31 = vsel %vm2657_vm5, %v474_v24, 0.0  ;;  %v473_v37 = vsel %vm468_vm1, %v462_v1, %v463_v25  ;;  %v280_v41 = vmul.f32 %v2528_v16, %v268_v21  ;;  %v398_v61 = vand.u32 7, %v2713_v42  ;;  %v1935_v1 = vld [vmem:[%s3051_s2 + $0xa0] sm:$0xff] }
  0x1d   : > { %2081 = vmatmul.mubr.msk.f32.vlgmr.msra.gmra.mrb[0].mxu1 %vm528_vm0, %v2669_v15  ;;  %2164 = vmatmul.mubr.msk.f32.gmra.mrb[2].mxu0 %vm528_vm0, %v2601_v53  ;;  %v2727_v16 = vsel %vm2675_vm6, %v473_v37, 0.0  ;;  %v342_v63 = vand.u32 7, %v2513_v12  ;;  %v464_v5 = vrot.slane %v2740_v59, 7  ;;  %v465_v7 = vrot.slane %v2742_v60, 7 }
  0x1e   : > { %2263 = vmatpush3.bf16.msra.mxu1 %v2562_v28  ;;  %2299 = vmatpush3.bf16.msra.mxu0 %v2296_v46  ;;  %v1926_v28 = vld [vmem:[%s3051_s2 + $0x58] sm:$0xff]  ;;  %v384_v46 = vand.u32 7, %v2612_v58  ;;  %v292_v56 = vadd.f32 %v2549_v20, %v280_v41  ;;  %vm486_vm8 = vcmp.ge.s32.totalorder %v391_v54, 1  ;;  %v1272_v8 = vrot.slane %v2594_v49, 1 }
  0x1f   : > { %2083 = vmatprep.mubr.msk.f32.mxu1 %vm528_vm0, %v2684_v23  ;;  %2180 = vmatprep.mubr.msk.f32.mxu0 %vm528_vm0, %v2596_v50  ;;  %v2304_v62 = vpack.c.bf16 %v1926_v28, %v1925_v43  ;;  %v1273_v11 = vrot.slane %v2596_v50, 1  ;;  %v471_v18 = vsel %vm468_vm1, %v464_v5, %v465_v7  ;;  %vm487_vm10 = vcmp.ge.s32.totalorder %v398_v61, 1  ;;  %v1879_v43 = vld [vmem:[%s3051_s2 + $0xd0] sm:$0xff]  ;;  %v1880_v28 = vld [vmem:[%s3051_s2 + $0xd8] sm:$0xff] }
  0x20   : > { %2265 = vmatprep.subr.bf16.mxu1 %v2264_v10  ;;  %2301 = vmatprep.subr.bf16.mxu0 %v2300_v29  ;;  %v2749_v20 = vmax.f32 %v292_v56, 0.0  ;;  %vm2764_vm7 = vcmp.ge.s32.totalorder %v384_v46, 1  ;;  %v2308_v19 = vpack.c.bf16 %v1936_v3, %v1935_v1  ;;  %v2788_v24 = vsel %vm486_vm8, %v471_v18, 0.0  ;;  %v1937_v56 = vld [vmem:[%s3051_s2 + $0xb0] sm:$0xff]  ;;  %v1890_v3 = vld [vmem:[%s3051_s2 + $0x28] sm:$0xff] }
  0x21   : > { %2084 = vmatmul.mubr.msk.f32.gmra.mrb[2].mxu1 %vm528_vm0, %v2695_v31  ;;  %2181 = vmatmul.mubr.msk.f32.vlgmr.msra.gmra.mrb[0].mxu0 %vm528_vm0, %v2598_v51  ;;  %vm2796_vm11 = vcmp.ge.s32.totalorder %v342_v63, 1  ;;  %v1274_v32 = vrot.slane %v2598_v51, 1  ;;  %v1290_v34 = vsel %vm1281_vm9, %v2753_v0, %v1272_v8  ;;  %vm2810_vm12 = vcmp.le.s32.totalorder %v342_v63, 6 }
  0x22   : > { %2086 = vmatprep.mubr.msk.f32.mxu1 %vm528_vm0, %v2727_v16  ;;  %2183 = vmatprep.mubr.msk.f32.mxu0 %vm528_vm0, %v2601_v53  ;;  %v466_v13 = vrot.slane %v2749_v20, 7  ;;  %v509_v37 = vsel %vm2796_vm11, %v2560_v27, 0.0  ;;  %v1289_v41 = vsel %vm1281_vm9, %v1272_v8, %v1273_v11  ;;  %v1322_v45 = vsel %vm2810_vm12, %v1290_v34, 0.0 }
  0x23   : > { %2267 = vmatpush3.bf16.msra.mxu1 %v2264_v10  ;;  %2303 = vmatpush3.bf16.msra.mxu0 %v2300_v29  ;;  %v472_v10 = vsel %vm468_vm1, %v463_v25, %v464_v5  ;;  %v1288_v17 = vsel %vm1281_vm9, %v1273_v11, %v1274_v32  ;;  %v1275_v38 = vrot.slane %v2601_v53, 1  ;;  %v1276_v48 = vrot.slane %v2640_v2, 1  ;;  %v1892_v29 = vld [vmem:[%s3051_s2 + $0x38] sm:$0xff] }
  0x24   : > { %2269 = vmatprep.subr.bf16.mxu1 %v2734_v57  ;;  %2305 = vmatprep.subr.bf16.mxu0 %v2304_v62  ;;  %v2786_v21 = vsel %vm2764_vm7, %v472_v10, 0.0  ;;  %v470_v25 = vsel %vm468_vm1, %v465_v7, %v466_v13  ;;  %v2272_v63 = vpack.c.bf16 %v1880_v28, %v1879_v43  ;;  %v1323_v1 = vsel %vm1293_vm13, %v1289_v41, 0.0 }
  0x25   : > { %2184 = vmatmul.mubr.msk.f32.gmra.mrb[2].mxu0 %vm528_vm0, %v2640_v2  ;;  %2087 = vmatmul.mubr.msk.f32.gmra.mrb[4].mxu1 %vm528_vm0, %v2786_v21  ;;  %v2805_v33 = vsel %vm487_vm10, %v470_v25, 0.0  ;;  %v2850_v22 = vsel %vm1294_vm14, %v1288_v17, 0.0  ;;  %v1287_v5 = vsel %vm1281_vm9, %v1274_v32, %v1275_v38  ;;  %v1277_v6 = vrot.slane %v2740_v59, 1 }
  0x26   : > { %2186 = vmatprep.mubr.msk.f32.mxu0 %vm528_vm0, %v2740_v59  ;;  %2089 = vmatprep.mubr.msk.f32.mxu1 %vm528_vm0, %v2788_v24  ;;  %v1286_v8 = vsel %vm1281_vm9, %v1275_v38, %v1276_v48  ;;  %vm1296_vm2 = vcmp.le.s32.totalorder %v370_v52, 6  ;;  %v2882_v11 = vsel %vm1295_vm15, %v1287_v5, 0.0  ;;  %vm1297_vm3 = vcmp.le.s32.totalorder %v377_v55, 6  ;;  %v1723_v5 = vld [vmem:[%s3008_s8 + $0x38] sm:$0xff] }
  0x27   : > { %2307 = vmatpush3.bf16.msra.mxu0 %v2304_v62  ;;  %v1938_v62 = vld [vmem:[%s3051_s2 + $0xb8] sm:$0xff]  ;;  %v2888_v36 = vsel %vm1296_vm2, %v1286_v8, 0.0  ;;  %v1285_v52 = vsel %vm1281_vm9, %v1276_v48, %v1277_v6  ;;  %v1279_v10 = vrot.slane %v2749_v20, 1  ;;  %v2316_v18 = vpack.c.bf16 %v1948_v47, %v1947_v30  ;;  %v1721_v48 = vld [vmem:[%s3008_s8 + $0x28] sm:$0xff]  ;;  %v1722_v8 = vld [vmem:[%s3008_s8 + $0x30] sm:$0xff] }
  0x28   : > { %2309 = vmatprep.subr.bf16.mxu0 %v2308_v19  ;;  %v2312_v7 = vpack.c.bf16 %v1938_v62, %v1937_v56  ;;  %vm1298_vm4 = vcmp.le.s32.totalorder %v384_v46, 6  ;;  %v1327_v55 = vsel %vm1297_vm3, %v1285_v52, 0.0  ;;  %vm1299_vm5 = vcmp.le.s32.totalorder %v391_v54, 6  ;;  %v1891_v46 = vld [vmem:[%s3051_s2 + $0x30] sm:$0xff]  ;;  %v1950_v54 = vld [vmem:[%s3051_s2 + $0x118] sm:$0xff] }
  0x29   : > { %2187 = vmatmul.mubr.msk.f32.gmra.mrb[4].mxu0 %vm528_vm0, %v2742_v60  ;;  %2090 = vmatmul.mubr.msk.f32.gmra.mrb[6].mxu1 %vm528_vm0, %v2805_v33  ;;  %v2280_v32 = vpack.c.bf16 %v1892_v29, %v1891_v46  ;;  %v337_v34 = vadd.s32 72, %v2513_v12  ;;  %v2320_v35 = vpack.c.bf16 %v1950_v54, %v1949_v39  ;;  %vm1300_vm7 = vcmp.le.s32.totalorder %v398_v61, 6 }
  0x2a   : > { %2189 = vmatprep.mubr.msk.f32.mxu0 %vm528_vm0, %v2749_v20  ;;  %2100 = vmatprep.mubr.msk.f32.mxu1 %vm528_vm0, %v509_v37 }
  0x2d   : > { %2190 = vmatmul.mubr.f32.gmra.mrb[6].mxu0 %v2441_v26  ;;  %2101 = vmatmul.mubr.msk.f32.vlgmr.msra.gmra.mrb[0].mxu1 %vm528_vm0, %v2665_v14  ;;  %v1278_v14 = vrot.slane %v2742_v60, 1 }
  0x2e   : > { %2200 = vmatprep.mubr.msk.f32.mxu0 %vm528_vm0, %v1322_v45  ;;  %2271 = vmatpush3.bf16.msra.mxu1 %v2734_v57  ;;  %v2276_v57 = vpack.c.bf16 %v1890_v3, %v1889_v44 }
  0x2f   : > { %2103 = vmatprep.mubr.msk.f32.mxu1 %vm528_vm0, %v2669_v15  ;;  %2273 = vmatprep.subr.bf16.mxu1 %v2272_v63  ;;  %v1284_v40 = vsel %vm1281_vm9, %v1277_v6, %v1278_v14  ;;  %v1283_v25 = vsel %vm1281_vm9, %v1278_v14, %v1279_v10 }
  0x30   : > { %v1329_v58 = vsel %vm1299_vm5, %v1283_v25, 0.0 }
  0x31   : > { %2201 = vmatmul.mubr.msk.f32.vlgmr.msra.gmra.mrb[0].mxu0 %vm528_vm0, %v1323_v1  ;;  %2104 = vmatmul.mubr.msk.f32.gmra.mrb[2].mxu1 %vm528_vm0, %v2684_v23 }
  0x32   : > { %2203 = vmatprep.mubr.msk.f32.mxu0 %vm528_vm0, %v2850_v22  ;;  %2311 = vmatpush3.bf16.msra.mxu0 %v2308_v19  ;;  %v1328_v19 = vsel %vm1298_vm4, %v1284_v40, 0.0 }
  0x33   : > { %2313 = vmatprep.subr.bf16.mxu0 %v2312_v7  ;;  %2106 = vmatprep.mubr.msk.f32.mxu1 %vm528_vm0, %v2695_v31 }
  0x34   : > { %2275 = vmatpush3.bf16.msra.mxu1 %v2272_v63  ;;  %v1720_v63 = vld [vmem:[%s3008_s8 + $0x20] sm:$0xff] }
  0x35   : > { %2204 = vmatmul.mubr.msk.f32.gmra.mrb[2].mxu0 %vm528_vm0, %v2882_v11  ;;  %2277 = vmatprep.subr.bf16.mxu1 %v2276_v57 }
  0x36   : > { %2206 = vmatprep.mubr.msk.f32.mxu0 %vm528_vm0, %v2888_v36  ;;  %2315 = vmatpush3.bf16.msra.mxu0 %v2312_v7 }
  0x37   : > { %2107 = vmatmul.mubr.msk.f32.gmra.mrb[4].mxu1 %vm528_vm0, %v2727_v16  ;;  %2317 = vmatprep.subr.bf16.mxu0 %v2316_v18 }
  0x38   : > { %2109 = vmatprep.mubr.msk.f32.mxu1 %vm528_vm0, %v2786_v21 }
  0x39   : > { %2207 = vmatmul.mubr.msk.f32.gmra.mrb[4].mxu0 %vm528_vm0, %v1327_v55 }
  0x3a   : > { %2209 = vmatprep.mubr.msk.f32.mxu0 %vm528_vm0, %v1328_v19 }
  0x3b   : > { %2110 = vmatmul.mubr.msk.f32.gmra.mrb[6].mxu1 %vm528_vm0, %v2788_v24 }
  0x3c   : > { %2120 = vmatprep.mubr.msk.f32.mxu1 %vm528_vm0, %v2669_v15  ;;  %v405_v15 = vand.u32 7, %v337_v34 }
  0x3d   : > { %2210 = vmatmul.mubr.msk.f32.gmra.mrb[6].mxu0 %vm528_vm0, %v1329_v58 }
  0x3e   : > { %2220 = vmatprep.mubr.msk.f32.mxu0 %vm528_vm0, %v1323_v1  ;;  %vm488_vm6 = vcmp.ge.s32.totalorder %v405_v15, 1 }
  0x3f   : > { %2121 = vmatmul.mubr.msk.f32.vlgmr.msra.gmra.mrb[0].mxu1 %vm528_vm0, %v2684_v23  ;;  %v469_v23 = vsel %vm468_vm1, %v466_v13, %v2560_v27  ;;  %vm1301_vm1 = vcmp.le.s32.totalorder %v405_v15, 6 }
  0x40   : > { %2279 = vmatpush3.bf16.msra.mxu1 %v2276_v57  ;;  %2123 = vmatprep.mubr.msk.f32.mxu1 %vm528_vm0, %v2695_v31  ;;  %v1282_v31 = vsel %vm1281_vm9, %v1279_v10, %v2753_v0  ;;  %v518_v27 = vsel %vm488_vm6, %v469_v23, 0.0 }
  0x41   : > { %2221 = vmatmul.mubr.msk.f32.vlgmr.msra.gmra.mrb[0].mxu0 %vm528_vm0, %v2850_v22  ;;  %2281 = vmatprep.subr.bf16.mxu1 %v2280_v32 }
  0x42   : > { %2223 = vmatprep.mubr.msk.f32.mxu0 %vm528_vm0, %v2882_v11  ;;  %2319 = vmatpush3.bf16.msra.mxu0 %v2316_v18 }
  0x43   : > { %2124 = vmatmul.mubr.msk.f32.gmra.mrb[2].mxu1 %vm528_vm0, %v2727_v16  ;;  %2321 = vmatprep.subr.bf16.mxu0 %v2320_v35  ;;  %v1330_v16 = vsel %vm1300_vm7, %v1282_v31, 0.0 }
  0x44   : > { %2126 = vmatprep.mubr.msk.f32.mxu1 %vm528_vm0, %v2786_v21  ;;  %2283 = vmatpush3.bf16.msra.mxu1 %v2280_v32 }
  0x45   : > { %2224 = vmatmul.mubr.msk.f32.gmra.mrb[2].mxu0 %vm528_vm0, %v2888_v36  ;;  %2324 = vmatprep.subr.bf16.mxu1 %v2494_v4 }
  0x46   : > { %2226 = vmatprep.mubr.msk.f32.mxu0 %vm528_vm0, %v1327_v55  ;;  %2323 = vmatpush3.bf16.msra.mxu0 %v2320_v35 }
  0x47   : > { %2127 = vmatmul.mubr.msk.f32.gmra.mrb[4].mxu1 %vm528_vm0, %v2788_v24  ;;  %v1718_v24 = vld [vmem:[%s3008_s8 + $0x10] sm:$0xff] }
  0x48   : > { %2129 = vmatprep.mubr.msk.f32.mxu1 %vm528_vm0, %v2805_v33 }
  0x49   : > { %2227 = vmatmul.mubr.msk.f32.gmra.mrb[4].mxu0 %vm528_vm0, %v1328_v19 }
  0x4a   : > { %2229 = vmatprep.mubr.msk.f32.mxu0 %vm528_vm0, %v1329_v58 }
  0x4b   : > { %2130 = vmatmul.mubr.msk.f32.gmra.mrb[6].mxu1 %vm528_vm0, %v518_v27 }
  0x4c   : > { %2140 = vmatprep.mubr.f32.mxu1 %v2441_v26 }
  0x4d   : > { %2230 = vmatmul.mubr.msk.f32.gmra.mrb[6].mxu0 %vm528_vm0, %v1330_v16 }
  0x4e   : > { %2240 = vmatprep.mubr.msk.f32.mxu0 %vm528_vm0, %v2850_v22 }
  0x4f   : > { %2141 = vmatmul.mubr.msk.f32.vlgmr.msra.gmra.mrb[0].mxu1 %vm528_vm0, %v2594_v49  ;;  %v1717_v49 = vld [vmem:[%s3008_s8 + $0x8] sm:$0xff] }
  0x50   : > { %2326 = vmatpush3.bf16.msra.mxu1 %v2494_v4  ;;  %2143 = vmatprep.mubr.msk.f32.mxu1 %vm528_vm0, %v2596_v50  ;;  %v1331_v4 = vsel %vm1301_vm1, %v2753_v0, 0.0  ;;  %v1719_v0 = vld [vmem:[%s3008_s8 + $0x18] sm:$0xff] }
  0x51   : > { %2241 = vmatmul.mubr.msk.f32.vlgmr.msra.gmra.mrb[0].mxu0 %vm528_vm0, %v2882_v11  ;;  %2325 = vmatprep.subr.bf16.mxu1 %v2505_v9 }
  0x52   : > { %2243 = vmatprep.mubr.msk.f32.mxu0 %vm528_vm0, %v2888_v36 }
  0x53   : > { %2144 = vmatmul.mubr.msk.f32.gmra.mrb[2].mxu1 %vm528_vm0, %v2598_v51 }
  0x54   : > { %2146 = vmatprep.mubr.msk.f32.mxu1 %vm528_vm0, %v2601_v53  ;;  %2327 = vmatpush3.bf16.msra.mxu1 %v2505_v9  ;;  %v1716_v53 = vld [vmem:[%s3008_s8] sm:$0xff] }
  0x55   : > { %2244 = vmatmul.mubr.msk.f32.gmra.mrb[2].mxu0 %vm528_vm0, %v1327_v55 }
  0x56   : > { %2246 = vmatprep.mubr.msk.f32.mxu0 %vm528_vm0, %v1328_v19 }
  0x57   : > { %2147 = vmatmul.mubr.msk.f32.gmra.mrb[4].mxu1 %vm528_vm0, %v2640_v2 }
  0x58   : > { %2149 = vmatprep.mubr.msk.f32.mxu1 %vm528_vm0, %v2740_v59 }
  0x59   : > { %2247 = vmatmul.mubr.msk.f32.gmra.mrb[4].mxu0 %vm528_vm0, %v1329_v58 }
  0x5a   : > { %2249 = vmatprep.mubr.msk.f32.mxu0 %vm528_vm0, %v1330_v16 }
  0x5b   : > { %2150 = vmatmul.mubr.msk.f32.gmra.mrb[6].mxu1 %vm528_vm0, %v2742_v60 }
  0x5c   : > { %2166 = vmatprep.mubr.msk.f32.mxu1 %vm528_vm0, %v2640_v2 }
  0x5d   : > { %2250 = vmatmul.mubr.msk.f32.gmra.mrb[6].mxu0 %vm528_vm0, %v1331_v4 }
  0x5f   : > { %2167 = vmatmul.mubr.msk.f32.vlgmr.msra.gmra.mrb[4].mxu1 %vm528_vm0, %v2740_v59 }
  0x60   : > { %2169 = vmatprep.mubr.msk.f32.mxu1 %vm528_vm0, %v2742_v60 }
  0x63   : > { %2170 = vmatmul.mubr.msk.f32.gmra.mrb[6].mxu1 %vm528_vm0, %v2749_v20 }
 0x122   : > { %v2142_v9 = vpop.f32.mrb[0].mxu1 }
 0x123   : > { %v982_v12 = vpop.f32.mrb[1].mxu1 }
 0x124   : > { %v2242_v26 = vpop.f32.mrb[0].mxu0 }
 0x125   : > { %v2328_v50 = vadd.f32 %v2242_v26, %v2142_v9  ;;  %v1669_v51 = vpop.f32.mrb[1].mxu0 }
 0x126   : > { %v2145_v2 = vpop.f32.mrb[2].mxu1  ;;  %v2329_v42 = vadd.f32 %v1669_v51, %v982_v12 }
 0x127   : > { %v1725_v59 = vadd.f32 %v2328_v50, %v1717_v49  ;;  %v992_v60 = vpop.f32.mrb[3].mxu1 }
 0x128   : > { %v1724_v61 = vadd.f32 %v2329_v42, %v1716_v53  ;;  %v2245_v20 = vpop.f32.mrb[2].mxu0 }
 0x129   : > { %1733 = vst.msk [vmem:[%s3016_s11 + $0x8] sm:$0xff] %vm528_vm0, %v1725_v59  ;;  %v2330_v13 = vadd.f32 %v2245_v20, %v2145_v2  ;;  %v1679_v21 = vpop.f32.mrb[3].mxu0 }
 0x12a   : > { %1732 = vst.msk [vmem:[%s3016_s11] sm:$0xff] %vm528_vm0, %v1724_v61  ;;  %v2331_v33 = vadd.f32 %v1679_v21, %v992_v60 }
 0x12b   : > { %v1727_v37 = vadd.f32 %v2330_v13, %v1719_v0 }
 0x12c   : > { %v1726_v41 = vadd.f32 %v2331_v33, %v1718_v24  ;;  %v2248_v43 = vpop.f32.mrb[4].mxu0 }
 0x12d   : > { %1735 = vst.msk [vmem:[%s3016_s11 + $0x18] sm:$0xff] %vm528_vm0, %v1727_v37  ;;  %v1689_v28 = vpop.f32.mrb[5].mxu0 }
 0x12e   : > { %1734 = vst.msk [vmem:[%s3016_s11 + $0x10] sm:$0xff] %vm528_vm0, %v1726_v41 }
 0x130   : > { %v2251_v45 = vpop.f32.mrb[6].mxu0 }
 0x131   : > { %v1699_v17 = vpop.f32.mrb[7].mxu0 }
 0x132   : > { %v2168_v38 = vpop.f32.mrb[4].mxu1 }
 0x133   : > { %v2332_v56 = vadd.f32 %v2248_v43, %v2168_v38  ;;  %v1123_v62 = vpop.f32.mrb[5].mxu1 }
 0x134   : > { %v2333_v1 = vadd.f32 %v1689_v28, %v1123_v62 }
 0x135   : > { %v1729_v22 = vadd.f32 %v2332_v56, %v1721_v48 }
 0x136   : > { %v1728_v44 = vadd.f32 %v2333_v1, %v1720_v63  ;;  %v2171_v3 = vpop.f32.mrb[6].mxu1 }
 0x137   : > { %1737 = vst.msk [vmem:[%s3016_s11 + $0x28] sm:$0xff] %vm528_vm0, %v1729_v22  ;;  %v2334_v6 = vadd.f32 %v2251_v45, %v2171_v3  ;;  %v1133_v7 = vpop.f32.mrb[7].mxu1 }
 0x138   : > { %1736 = vst.msk [vmem:[%s3016_s11 + $0x20] sm:$0xff] %vm528_vm0, %v1728_v44  ;;  %v2335_v14 = vadd.f32 %v1699_v17, %v1133_v7 }
 0x139   : > { %v1731_v30 = vadd.f32 %v2334_v6, %v1723_v5 }
 0x13a   : > { %v1730_v47 = vadd.f32 %v2335_v14, %v1722_v8 }
 0x13b   : > { %1739 = vst.msk [vmem:[%s3016_s11 + $0x38] sm:$0xff] %vm528_vm0, %v1731_v30 }
 0x13c   : > { %1738 = vst.msk [vmem:[%s3016_s11 + $0x30] sm:$0xff] %vm528_vm0, %v1730_v47 }
 0x13d PF: > { %s14_s17 = sadd.s32 1, %s2439_s17   ;;  %s3070_s15 = smov %s2435_s16 }
 0x13e   : > { %p11_p5 = scmp.ge.s32.totalorder %s14_s17, 4   ;;  %s3071_s16 = smov %s3073_s18 }
 0x140   :  { %13 = sbr.rel (!%p11_p5) target bundleno = 2 (0x2), region = 80 }

</bundles_post_ra>
